<compile_context>
chip_gen: v7x
topology: tpu7x:2x2x1
jax: 0.10.0
libtpu: 0.0.40
codegen_flags: <defaults>
</compile_context>

<pallas_src>
import functools
import math

import jax
import jax.numpy as jnp
from jax.experimental import pallas as pl
from jax.experimental.pallas import tpu as pltpu

# MXU operand dtype. float32 reproduces the PyTorch module's numerics exactly; flip to
# jnp.bfloat16 on v6e/v7x for ~2x MXU throughput and half the weight/activation bytes
# (accumulation stays f32 via preferred_element_type; LN/softmax stats stay f32).
_MXU_DTYPE = jnp.float32

# Explicit scoped-VMEM limit: fits v7x's 64 MiB physical VMEM with headroom, and is well
# above the 32 MiB default so the larger double-buffered tiles below are legal.
_VMEM_LIMIT = 48 * 1024 * 1024


def _compiler_params(dimension_semantics):
    return pltpu.CompilerParams(dimension_semantics=dimension_semantics,
                                vmem_limit_bytes=_VMEM_LIMIT)


# ---------------------------------------------------------------------------
# Tile-size helpers (adapt to small demo shapes, obey the (8,128)-or-full rule)
# ---------------------------------------------------------------------------

def _pick_tile(dim, target, align):
    """Largest block <= target that divides `dim` and is a multiple of `align`;
    falls back to the full dim (always legal) for small / odd sizes."""
    if dim <= target or dim % align != 0:
        return dim
    t = (target // align) * align
    while t >= align:
        if dim % t == 0:
            return t
        t -= align
    return dim


def _pick_divisor(dim, target):
    if dim <= target:
        return dim
    for t in range(target, 0, -1):
        if dim % t == 0:
            return t
    return dim


# ---------------------------------------------------------------------------
# Pallas kernels
# ---------------------------------------------------------------------------

def _layernorm_f32(x, w, b, eps=1e-5):
    # torch.nn.LayerNorm: biased variance, eps inside the sqrt.
    mean = jnp.mean(x, axis=-1, keepdims=True)
    var = jnp.mean((x - mean) ** 2, axis=-1, keepdims=True)
    return (x - mean) * jax.lax.rsqrt(var + eps) * w + b


def _ln_qkv_kernel(x_ref, lnw_ref, lnb_ref, wq_ref, wk_ref, wv_ref,
                   bq_ref, bk_ref, bv_ref, q_ref, k_ref, v_ref):
    # Fused pre-norm LayerNorm + the three in_proj slices (Q, K, V).
    x = x_ref[...].astype(jnp.float32)
    h = _layernorm_f32(x, lnw_ref[...].astype(jnp.float32),
                       lnb_ref[...].astype(jnp.float32))
    h = h.astype(_MXU_DTYPE)
    for w_ref, b_ref, o_ref in ((wq_ref, bq_ref, q_ref),
                                (wk_ref, bk_ref, k_ref),
                                (wv_ref, bv_ref, v_ref)):
        y = jnp.dot(h, w_ref[...].astype(_MXU_DTYPE),
                    preferred_element_type=jnp.float32)
        o_ref[...] = (y + b_ref[...].astype(jnp.float32)).astype(o_ref.dtype)


def _ln_linear_kernel(x_ref, lnw_ref, lnb_ref, w_ref, b_ref, o_ref, *, activation):
    # Fused pre-norm LayerNorm + linear (+ optional ReLU). Used for LN1 + fc1.
    x = x_ref[...].astype(jnp.float32)
    h = _layernorm_f32(x, lnw_ref[...].astype(jnp.float32),
                       lnb_ref[...].astype(jnp.float32))
    y = jnp.dot(h.astype(_MXU_DTYPE), w_ref[...].astype(_MXU_DTYPE),
                preferred_element_type=jnp.float32)
    y = y + b_ref[...].astype(jnp.float32)
    if activation == "relu":
        y = jnp.maximum(y, 0.0)
    o_ref[...] = y.astype(o_ref.dtype)


def _linear_residual_kernel(x_ref, w_ref, b_ref, r_ref, o_ref, acc_ref):
    # o = residual + (x @ w + b), K-tiled with an f32 VMEM accumulator.
    @pl.when(pl.program_id(2) == 0)
    def _():
        acc_ref[...] = jnp.zeros(acc_ref.shape, jnp.float32)

    acc_ref[...] += jnp.dot(x_ref[...].astype(_MXU_DTYPE),
                            w_ref[...].astype(_MXU_DTYPE),
                            preferred_element_type=jnp.float32)

    @pl.when(pl.program_id(2) == pl.num_programs(2) - 1)
    def _():
        o_ref[...] = (acc_ref[...] + b_ref[...].astype(jnp.float32)
                      + r_ref[...].astype(jnp.float32)).astype(o_ref.dtype)


def _flash_mha_kernel(q_ref, k_ref, v_ref, o_ref, m_sc, l_sc, acc_sc, *, scaling):
    # Flash-style online softmax over the KV grid axis; never materializes (T, T) in HBM
    # and keeps per-step VMEM at O(bh_blk * tq * tk).
    ki = pl.program_id(2)

    @pl.when(ki == 0)
    def _():
        m_sc[...] = jnp.full(m_sc.shape, -jnp.inf, jnp.float32)
        l_sc[...] = jnp.zeros(l_sc.shape, jnp.float32)
        acc_sc[...] = jnp.zeros(acc_sc.shape, jnp.float32)

    q = (q_ref[...].astype(jnp.float32) * scaling).astype(_MXU_DTYPE)
    k = k_ref[...].astype(_MXU_DTYPE)
    s = jnp.einsum("bqd,bkd->bqk", q, k,
                   preferred_element_type=jnp.float32)          # (bh, tq, tk)

    m_prev = m_sc[...]
    m_new = jnp.maximum(m_prev, jnp.max(s, axis=-1, keepdims=True))
    alpha = jnp.exp(m_prev - m_new)
    p = jnp.exp(s - m_new)
    l_sc[...] = alpha * l_sc[...] + jnp.sum(p, axis=-1, keepdims=True)
    pv = jnp.einsum("bqk,bkd->bqd", p.astype(_MXU_DTYPE),
                    v_ref[...].astype(_MXU_DTYPE),
                    preferred_element_type=jnp.float32)          # (bh, tq, dh)
    acc_sc[...] = alpha * acc_sc[...] + pv
    m_sc[...] = m_new

    @pl.when(ki == pl.num_programs(2) - 1)
    def _():
        # EUP approximate reciprocal instead of a VALU divide.
        o_ref[...] = (acc_sc[...] *
                      pl.reciprocal(l_sc[...], approx=True)).astype(o_ref.dtype)


# ---------------------------------------------------------------------------
# pallas_call wrappers (tiled + double-buffered via BlockSpec)
# ---------------------------------------------------------------------------

def pallas_ln_qkv(x2d, lnw, lnb, wq, wk, wv, bq, bk, bv):
    n, e = x2d.shape
    tm = _pick_tile(n, 128, 8)
    tn = _pick_tile(e, 256, 128)
    grid = (n // tm, e // tn)
    x_spec = pl.BlockSpec((tm, e), lambda i, j: (i, 0))
    ln_spec = pl.BlockSpec((1, e), lambda i, j: (0, 0))
    w_spec = pl.BlockSpec((e, tn), lambda i, j: (0, j))
    b_spec = pl.BlockSpec((1, tn), lambda i, j: (0, j))
    o_spec = pl.BlockSpec((tm, tn), lambda i, j: (i, j))
    o_sds = jax.ShapeDtypeStruct((n, e), x2d.dtype)
    return pl.pallas_call(
        _ln_qkv_kernel,
        out_shape=(o_sds, o_sds, o_sds),
        grid=grid,
        in_specs=[x_spec, ln_spec, ln_spec,
                  w_spec, w_spec, w_spec,
                  b_spec, b_spec, b_spec],
        out_specs=[o_spec, o_spec, o_spec],
        compiler_params=_compiler_params(("parallel", "parallel")),
    )(x2d, lnw, lnb, wq, wk, wv, bq, bk, bv)


def pallas_ln_linear(x2d, lnw, lnb, w, b, activation=None):
    n, e = x2d.shape
    out_dim = w.shape[1]
    tm = _pick_tile(n, 128, 8)
    tn = _pick_tile(out_dim, 256, 128)
    grid = (n // tm, out_dim // tn)
    return pl.pallas_call(
        functools.partial(_ln_linear_kernel, activation=activation),
        out_shape=jax.ShapeDtypeStruct((n, out_dim), x2d.dtype),
        grid=grid,
        in_specs=[pl.BlockSpec((tm, e), lambda i, j: (i, 0)),
                  pl.BlockSpec((1, e), lambda i, j: (0, 0)),
                  pl.BlockSpec((1, e), lambda i, j: (0, 0)),
                  pl.BlockSpec((e, tn), lambda i, j: (0, j)),
                  pl.BlockSpec((1, tn), lambda i, j: (0, j))],
        out_specs=pl.BlockSpec((tm, tn), lambda i, j: (i, j)),
        compiler_params=_compiler_params(("parallel", "parallel")),
    )(x2d, lnw, lnb, w, b)


def pallas_linear_residual(x2d, w, b, residual2d):
    n, kdim = x2d.shape
    out_dim = w.shape[1]
    tm = _pick_tile(n, 256, 8)
    tn = _pick_tile(out_dim, 256, 128)
    tk = _pick_tile(kdim, 512, 128)
    grid = (n // tm, out_dim // tn, kdim // tk)
    return pl.pallas_call(
        _linear_residual_kernel,
        out_shape=jax.ShapeDtypeStruct((n, out_dim), x2d.dtype),
        grid=grid,
        in_specs=[pl.BlockSpec((tm, tk), lambda i, j, k: (i, k)),
                  pl.BlockSpec((tk, tn), lambda i, j, k: (k, j)),
                  pl.BlockSpec((1, tn), lambda i, j, k: (0, j)),
                  pl.BlockSpec((tm, tn), lambda i, j, k: (i, j))],
        out_specs=pl.BlockSpec((tm, tn), lambda i, j, k: (i, j)),
        scratch_shapes=[pltpu.VMEM((tm, tn), jnp.float32)],
        compiler_params=_compiler_params(("parallel", "parallel", "arbitrary")),
    )(x2d, w, b, residual2d)


def pallas_flash_attention(q, k, v, scaling):
    # q, k, v: (B*H, T, Dh)
    bh, t, dh = q.shape
    bhb = _pick_divisor(bh, 16)
    tq = _pick_tile(t, 128, 8)
    tk = _pick_tile(t, 128, 8)
    grid = (bh // bhb, t // tq, t // tk)
    q_spec = pl.BlockSpec((bhb, tq, dh), lambda b, qi, ki: (b, qi, 0))
    kv_spec = pl.BlockSpec((bhb, tk, dh), lambda b, qi, ki: (b, ki, 0))
    o_spec = pl.BlockSpec((bhb, tq, dh), lambda b, qi, ki: (b, qi, 0))
    # TODO(synk): output last dim is head_dim (<128) -> masked partial stores; pack heads
    # into the lane dim for lane-dense stores on production configs.
    return pl.pallas_call(
        functools.partial(_flash_mha_kernel, scaling=scaling),
        out_shape=jax.ShapeDtypeStruct((bh, t, dh), q.dtype),
        grid=grid,
        in_specs=[q_spec, kv_spec, kv_spec],
        out_specs=o_spec,
        scratch_shapes=[pltpu.VMEM((bhb, tq, 1), jnp.float32),
                        pltpu.VMEM((bhb, tq, 1), jnp.float32),
                        pltpu.VMEM((bhb, tq, dh), jnp.float32)],
        compiler_params=_compiler_params(("parallel", "parallel", "arbitrary")),
    )(q, k, v)


# ---------------------------------------------------------------------------
# Parameters (weights pre-transposed / pre-split once, at creation time)
# ---------------------------------------------------------------------------

def _xavier_uniform(key, shape):
    fan_out, fan_in = shape
    bound = math.sqrt(6.0 / (fan_in + fan_out))
    return jax.random.uniform(key, shape, jnp.float32, -bound, bound)


def make_layer_params(key, embed_dim):
    e = embed_dim
    k1, k2, k3, k4 = jax.random.split(key, 4)
    in_proj_w = _xavier_uniform(k1, (3 * e, e))          # torch (out, in) layout
    wq, wk, wv = jnp.split(in_proj_w, 3, axis=0)
    zeros = lambda d: jnp.zeros((1, d), jnp.float32)
    return dict(
        ln0_w=jnp.ones((1, e), jnp.float32), ln0_b=zeros(e),
        wq=wq.T, wk=wk.T, wv=wv.T,                       # stored (in, out): no w.T per call
        bq=zeros(e), bk=zeros(e), bv=zeros(e),
        out_w=_xavier_uniform(k2, (e, e)).T, out_b=zeros(e),
        ln1_w=jnp.ones((1, e), jnp.float32), ln1_b=zeros(e),
        fc1_w=_xavier_uniform(k3, (4 * e, e)).T, fc1_b=zeros(4 * e),
        fc2_w=_xavier_uniform(k4, (e, 4 * e)).T, fc2_b=zeros(e),
    )


# ---------------------------------------------------------------------------
# Layer forward (dropouts are eval-mode no-ops; attn_mask=False -> no mask)
# ---------------------------------------------------------------------------

def transformer_encoder_layer(x, params, num_heads):
    """x: (seq_len, batch, embed_dim) -> (seq_len, batch, embed_dim)"""
    T, B, E = x.shape
    H = num_heads
    Dh = E // H
    N = T * B
    scaling = Dh ** (-0.5)
    p = params

    x2 = x.reshape(N, E)                   # time-major rows, matches torch T x B x C
    residual = x2

    # --- self-attention block (pre-norm): LN0 fused into the QKV projection ---
    q, k, v = pallas_ln_qkv(x2, p["ln0_w"], p["ln0_b"],
                            p["wq"], p["wk"], p["wv"],
                            p["bq"], p["bk"], p["bv"])

    def to_heads(t2d):                     # (N, E) time-major -> (B*H, T, Dh)
        return (t2d.reshape(T, B, H, Dh).transpose(1, 2, 0, 3).reshape(B * H, T, Dh))

    attn = pallas_flash_attention(to_heads(q), to_heads(k), to_heads(v), scaling)
    attn2 = attn.reshape(B, H, T, Dh).transpose(2, 0, 1, 3).reshape(N, E)

    x2 = pallas_linear_residual(attn2, p["out_w"], p["out_b"], residual)

    # --- feed-forward block (pre-norm): LN1 + fc1 + ReLU fused, fc2 + residual fused ---
    residual = x2
    h = pallas_ln_linear(x2, p["ln1_w"], p["ln1_b"], p["fc1_w"], p["fc1_b"],
                         activation="relu")
    x2 = pallas_linear_residual(h, p["fc2_w"], p["fc2_b"], residual)

    return x2.reshape(T, B, E)


# ---------------------------------------------------------------------------
# Pure-JAX reference (for a loose numerical check)
# ---------------------------------------------------------------------------

def reference_layer(x, params, num_heads):
    T, B, E = x.shape
    H = num_heads
    Dh = E // H
    p = params

    def ln(y, w, b):
        mean = jnp.mean(y, -1, keepdims=True)
        var = jnp.mean((y - mean) ** 2, -1, keepdims=True)
        return (y - mean) / jnp.sqrt(var + 1e-5) * w.reshape(-1) + b.reshape(-1)

    residual = x
    h = ln(x, p["ln0_w"], p["ln0_b"])
    q = (h @ p["wq"] + p["bq"].reshape(-1)) * (Dh ** -0.5)
    k = h @ p["wk"] + p["bk"].reshape(-1)
    v = h @ p["wv"] + p["bv"].reshape(-1)

    def heads(t):                          # (T, B, E) -> (B*H, T, Dh), torch layout
        return t.reshape(T, B * H, Dh).transpose(1, 0, 2)

    s = jnp.einsum("bqd,bkd->bqk", heads(q), heads(k))
    pw = jax.nn.softmax(s, axis=-1)
    a = jnp.einsum("bqk,bkd->bqd", pw, heads(v))
    a = a.transpose(1, 0, 2).reshape(T, B, E)
    x1 = residual + (a @ p["out_w"] + p["out_b"].reshape(-1))

    residual = x1
    h = ln(x1, p["ln1_w"], p["ln1_b"])
    h = jnp.maximum(h @ p["fc1_w"] + p["fc1_b"].reshape(-1), 0.0)
    return residual + (h @ p["fc2_w"] + p["fc2_b"].reshape(-1))


# ---------------------------------------------------------------------------
# main
# ---------------------------------------------------------------------------

if __name__ == "__main__":
    SEQ, BATCH, EMBED, HEADS = 8, 2, 32, 4

    key = jax.random.PRNGKey(0)
    k_in, k_par = jax.random.split(key)
    x = jax.random.normal(k_in, (SEQ, BATCH, EMBED), jnp.float32)
    params = make_layer_params(k_par, EMBED)

    fwd = jax.jit(functools.partial(transformer_encoder_layer, num_heads=HEADS))
    out = jax.block_until_ready(fwd(x, params))

    assert out.shape == (SEQ, BATCH, EMBED), out.shape
    assert bool(jnp.all(jnp.isfinite(out)))

    ref = reference_layer(x, params, HEADS)
    assert bool(jnp.allclose(out, ref, rtol=5e-2, atol=5e-2)), \
        float(jnp.max(jnp.abs(out - ref)))

    print("KERNEL_OK")
</pallas_src>

<mosaic_0001>
module attributes {stable_mosaic.version = 11 : i64} {
  func.func @_flash_mha_kernel(%arg0: i32, %arg1: i32, %arg2: i32, %arg3: memref<8x8x8xf32, #tpu.memory_space<vmem>>, %arg4: memref<8x8x8xf32, #tpu.memory_space<vmem>>, %arg5: memref<8x8x8xf32, #tpu.memory_space<vmem>>, %arg6: memref<8x8x8xf32, #tpu.memory_space<vmem>>, %arg7: memref<8x8x1xf32, #tpu.memory_space<vmem>>, %arg8: memref<8x8x1xf32, #tpu.memory_space<vmem>>, %arg9: memref<8x8x8xf32, #tpu.memory_space<vmem>>) attributes {dimension_semantics = [#tpu.dimension_semantics<parallel>, #tpu.dimension_semantics<parallel>, #tpu.dimension_semantics<arbitrary>], iteration_bounds = array<i64: 1, 1, 1>, scalar_prefetch = 0 : i64, scratch_operands = 3 : i64, tpu.core_type = #tpu.core_type<tc>, window_params = [{transform_indices = @transform_0, window_bounds = array<i64: 8, 8, 8>}, {transform_indices = @transform_1, window_bounds = array<i64: 8, 8, 8>}, {transform_indices = @transform_2, window_bounds = array<i64: 8, 8, 8>}, {transform_indices = @transform_3, window_bounds = array<i64: 8, 8, 8>}]} {
    %c0_i32 = arith.constant 0 : i32
    %0 = arith.cmpi eq, %arg2, %c0_i32 : i32
    %1 = arith.extui %0 : i1 to i32
    %c0_i32_0 = arith.constant 0 : i32
    %2 = arith.cmpi ne, %1, %c0_i32_0 : i32
    scf.if %2 {
      %cst_33 = arith.constant 0xFF800000 : f32
      %34 = vector.broadcast %cst_33 : f32 to vector<8x8x1xf32>
      %c0_34 = arith.constant 0 : index
      %c0_35 = arith.constant 0 : index
      %c0_36 = arith.constant 0 : index
      %35 = vector.load %arg7[%c0_34, %c0_35, %c0_36] : memref<8x8x1xf32, #tpu.memory_space<vmem>>, vector<8x8x1xf32>
      tpu.vector_store %arg7[%c0_34, %c0_35, %c0_36], %34 {strides = array<i32>} : memref<8x8x1xf32, #tpu.memory_space<vmem>>, vector<8x8x1xf32>,
      %cst_37 = arith.constant 0.000000e+00 : f32
      %36 = vector.broadcast %cst_37 : f32 to vector<8x8x1xf32>
      %c0_38 = arith.constant 0 : index
      %c0_39 = arith.constant 0 : index
      %c0_40 = arith.constant 0 : index
      %37 = vector.load %arg8[%c0_38, %c0_39, %c0_40] : memref<8x8x1xf32, #tpu.memory_space<vmem>>, vector<8x8x1xf32>
      tpu.vector_store %arg8[%c0_38, %c0_39, %c0_40], %36 {strides = array<i32>} : memref<8x8x1xf32, #tpu.memory_space<vmem>>, vector<8x8x1xf32>,
      %cst_41 = arith.constant 0.000000e+00 : f32
      %38 = vector.broadcast %cst_41 : f32 to vector<8x8x8xf32>
      %c0_42 = arith.constant 0 : index
      %c0_43 = arith.constant 0 : index
      %c0_44 = arith.constant 0 : index
      %39 = vector.load %arg9[%c0_42, %c0_43, %c0_44] : memref<8x8x8xf32, #tpu.memory_space<vmem>>, vector<8x8x8xf32>
      tpu.vector_store %arg9[%c0_42, %c0_43, %c0_44], %38 {strides = array<i32>} : memref<8x8x8xf32, #tpu.memory_space<vmem>>, vector<8x8x8xf32>,
    } else {
    }
    %c0 = arith.constant 0 : index
    %c0_1 = arith.constant 0 : index
    %c0_2 = arith.constant 0 : index
    %3 = vector.load %arg3[%c0, %c0_1, %c0_2] : memref<8x8x8xf32, #tpu.memory_space<vmem>>, vector<8x8x8xf32>
    %cst = arith.constant 0.353553385 : f32
    %4 = vector.broadcast %cst : f32 to vector<8x8x8xf32>
    %5 = arith.mulf %3, %4 : vector<8x8x8xf32>
    %c0_3 = arith.constant 0 : index
    %c0_4 = arith.constant 0 : index
    %c0_5 = arith.constant 0 : index
    %6 = vector.load %arg4[%c0_3, %c0_4, %c0_5] : memref<8x8x8xf32, #tpu.memory_space<vmem>>, vector<8x8x8xf32>
    "tpu.trace_start"() <{level = 10 : i32, message = "bqd,bkd->bqk"}> : () -> ()
    %cst_6 = arith.constant dense<0.000000e+00> : vector<8x8x8xf32>
    %7 = tpu.matmul %5, %6, %cst_6 {dimension_numbers = #tpu.dot_dimension_numbers<[2], [2], [1], [1], [0, 0, 0, 1, 1, 1], [0], [0]>} : vector<8x8x8xf32>, vector<8x8x8xf32>, vector<8x8x8xf32> -> vector<8x8x8xf32>
    "tpu.trace_stop"() : () -> ()
    %c0_7 = arith.constant 0 : index
    %c0_8 = arith.constant 0 : index
    %c0_9 = arith.constant 0 : index
    %8 = vector.load %arg7[%c0_7, %c0_8, %c0_9] : memref<8x8x1xf32, #tpu.memory_space<vmem>>, vector<8x8x1xf32>
    %cst_10 = arith.constant dense<0xFF800000> : vector<8x8xf32>
    %9 = vector.multi_reduction <maximumf>, %7, %cst_10 [2] : vector<8x8x8xf32> to vector<8x8xf32>
    %10 = vector.shape_cast %9 : vector<8x8xf32> to vector<8x8x1xf32>
    %11 = arith.maximumf %8, %10 : vector<8x8x1xf32>
    %12 = arith.subf %8, %11 : vector<8x8x1xf32>
    %13 = math.exp %12 : vector<8x8x1xf32>
    %14 = vector.broadcast %11 : vector<8x8x1xf32> to vector<8x8x8xf32>
    %15 = arith.subf %7, %14 : vector<8x8x8xf32>
    %16 = math.exp %15 : vector<8x8x8xf32>
    %c0_11 = arith.constant 0 : index
    %c0_12 = arith.constant 0 : index
    %c0_13 = arith.constant 0 : index
    %17 = vector.load %arg8[%c0_11, %c0_12, %c0_13] : memref<8x8x1xf32, #tpu.memory_space<vmem>>, vector<8x8x1xf32>
    %18 = arith.mulf %13, %17 : vector<8x8x1xf32>
    %cst_14 = arith.constant dense<0.000000e+00> : vector<8x8xf32>
    %19 = vector.multi_reduction <add>, %16, %cst_14 [2] : vector<8x8x8xf32> to vector<8x8xf32>
    %20 = vector.shape_cast %19 : vector<8x8xf32> to vector<8x8x1xf32>
    %21 = arith.addf %18, %20 : vector<8x8x1xf32>
    %c0_15 = arith.constant 0 : index
    %c0_16 = arith.constant 0 : index
    %c0_17 = arith.constant 0 : index
    %22 = vector.load %arg8[%c0_15, %c0_16, %c0_17] : memref<8x8x1xf32, #tpu.memory_space<vmem>>, vector<8x8x1xf32>
    tpu.vector_store %arg8[%c0_15, %c0_16, %c0_17], %21 {strides = array<i32>} : memref<8x8x1xf32, #tpu.memory_space<vmem>>, vector<8x8x1xf32>,
    %c0_18 = arith.constant 0 : index
    %c0_19 = arith.constant 0 : index
    %c0_20 = arith.constant 0 : index
    %23 = vector.load %arg5[%c0_18, %c0_19, %c0_20] : memref<8x8x8xf32, #tpu.memory_space<vmem>>, vector<8x8x8xf32>
    "tpu.trace_start"() <{level = 10 : i32, message = "bqk,bkd->bqd"}> : () -> ()
    %cst_21 = arith.constant dense<0.000000e+00> : vector<8x8x8xf32>
    %24 = tpu.matmul %16, %23, %cst_21 {dimension_numbers = #tpu.dot_dimension_numbers<[2], [1], [1], [2], [0, 0, 0, 1, 1, 2], [0], [0]>} : vector<8x8x8xf32>, vector<8x8x8xf32>, vector<8x8x8xf32> -> vector<8x8x8xf32>
    "tpu.trace_stop"() : () -> ()
    %c0_22 = arith.constant 0 : index
    %c0_23 = arith.constant 0 : index
    %c0_24 = arith.constant 0 : index
    %25 = vector.load %arg9[%c0_22, %c0_23, %c0_24] : memref<8x8x8xf32, #tpu.memory_space<vmem>>, vector<8x8x8xf32>
    %26 = vector.broadcast %13 : vector<8x8x1xf32> to vector<8x8x8xf32>
    %27 = arith.mulf %26, %25 : vector<8x8x8xf32>
    %28 = arith.addf %27, %24 : vector<8x8x8xf32>
    %c0_25 = arith.constant 0 : index
    %c0_26 = arith.constant 0 : index
    %c0_27 = arith.constant 0 : index
    %29 = vector.load %arg9[%c0_25, %c0_26, %c0_27] : memref<8x8x8xf32, #tpu.memory_space<vmem>>, vector<8x8x8xf32>
    tpu.vector_store %arg9[%c0_25, %c0_26, %c0_27], %28 {strides = array<i32>} : memref<8x8x8xf32, #tpu.memory_space<vmem>>, vector<8x8x8xf32>,
    %c0_28 = arith.constant 0 : index
    %c0_29 = arith.constant 0 : index
    %c0_30 = arith.constant 0 : index
    %30 = vector.load %arg7[%c0_28, %c0_29, %c0_30] : memref<8x8x1xf32, #tpu.memory_space<vmem>>, vector<8x8x1xf32>
    tpu.vector_store %arg7[%c0_28, %c0_29, %c0_30], %11 {strides = array<i32>} : memref<8x8x1xf32, #tpu.memory_space<vmem>>, vector<8x8x1xf32>,
    %c0_i32_31 = arith.constant 0 : i32
    %31 = arith.cmpi eq, %arg2, %c0_i32_31 : i32
    %32 = arith.extui %31 : i1 to i32
    %c0_i32_32 = arith.constant 0 : i32
    %33 = arith.cmpi ne, %32, %c0_i32_32 : i32
    scf.if %33 {
      %c0_33 = arith.constant 0 : index
      %c0_34 = arith.constant 0 : index
      %c0_35 = arith.constant 0 : index
      %34 = vector.load %arg9[%c0_33, %c0_34, %c0_35] : memref<8x8x8xf32, #tpu.memory_space<vmem>>, vector<8x8x8xf32>
      %c0_36 = arith.constant 0 : index
      %c0_37 = arith.constant 0 : index
      %c0_38 = arith.constant 0 : index
      %35 = vector.load %arg8[%c0_36, %c0_37, %c0_38] : memref<8x8x1xf32, #tpu.memory_space<vmem>>, vector<8x8x1xf32>
      %36 = tpu.reciprocal %35 {approx = true} : vector<8x8x1xf32> -> vector<8x8x1xf32>
      %37 = vector.broadcast %36 : vector<8x8x1xf32> to vector<8x8x8xf32>
      %38 = arith.mulf %34, %37 : vector<8x8x8xf32>
      %c0_39 = arith.constant 0 : index
      %c0_40 = arith.constant 0 : index
      %c0_41 = arith.constant 0 : index
      %39 = vector.load %arg6[%c0_39, %c0_40, %c0_41] : memref<8x8x8xf32, #tpu.memory_space<vmem>>, vector<8x8x8xf32>
      tpu.vector_store %arg6[%c0_39, %c0_40, %c0_41], %38 {strides = array<i32>} : memref<8x8x8xf32, #tpu.memory_space<vmem>>, vector<8x8x8xf32>,
    } else {
    }
    return
  }
  func.func @transform_0(%arg0: i32, %arg1: i32, %arg2: i32) -> (i32, i32, i32) {
    %c0_i32 = arith.constant 0 : i32
    %c0_i32_0 = arith.constant 0 : i32
    return %arg0, %arg1, %c0_i32 : i32, i32, i32
  }
  func.func @transform_1(%arg0: i32, %arg1: i32, %arg2: i32) -> (i32, i32, i32) {
    %c0_i32 = arith.constant 0 : i32
    %c0_i32_0 = arith.constant 0 : i32
    return %arg0, %arg2, %c0_i32 : i32, i32, i32
  }
  func.func @transform_2(%arg0: i32, %arg1: i32, %arg2: i32) -> (i32, i32, i32) {
    %c0_i32 = arith.constant 0 : i32
    %c0_i32_0 = arith.constant 0 : i32
    return %arg0, %arg2, %c0_i32 : i32, i32, i32
  }
  func.func @transform_3(%arg0: i32, %arg1: i32, %arg2: i32) -> (i32, i32, i32) {
    %c0_i32 = arith.constant 0 : i32
    %c0_i32_0 = arith.constant 0 : i32
    return %arg0, %arg1, %c0_i32 : i32, i32, i32
  }
}

module attributes {stable_mosaic.version = 11 : i64} {
  func.func @_ln_qkv_kernel(%arg0: i32, %arg1: i32, %arg2: memref<16x32xf32, #tpu.memory_space<vmem>>, %arg3: memref<1x32xf32, #tpu.memory_space<vmem>>, %arg4: memref<1x32xf32, #tpu.memory_space<vmem>>, %arg5: memref<32x32xf32, #tpu.memory_space<vmem>>, %arg6: memref<32x32xf32, #tpu.memory_space<vmem>>, %arg7: memref<32x32xf32, #tpu.memory_space<vmem>>, %arg8: memref<1x32xf32, #tpu.memory_space<vmem>>, %arg9: memref<1x32xf32, #tpu.memory_space<vmem>>, %arg10: memref<1x32xf32, #tpu.memory_space<vmem>>, %arg11: memref<16x32xf32, #tpu.memory_space<vmem>>, %arg12: memref<16x32xf32, #tpu.memory_space<vmem>>, %arg13: memref<16x32xf32, #tpu.memory_space<vmem>>) attributes {dimension_semantics = [#tpu.dimension_semantics<parallel>, #tpu.dimension_semantics<parallel>], iteration_bounds = array<i64: 1, 1>, scalar_prefetch = 0 : i64, scratch_operands = 0 : i64, tpu.core_type = #tpu.core_type<tc>, window_params = [{transform_indices = @transform_0, window_bounds = array<i64: 16, 32>}, {pipeline_mode = #tpu.pipeline_mode<synchronous>, transform_indices = @transform_1, window_bounds = array<i64: 1, 32>}, {pipeline_mode = #tpu.pipeline_mode<synchronous>, transform_indices = @transform_2, window_bounds = array<i64: 1, 32>}, {transform_indices = @transform_3, window_bounds = array<i64: 32, 32>}, {transform_indices = @transform_4, window_bounds = array<i64: 32, 32>}, {transform_indices = @transform_5, window_bounds = array<i64: 32, 32>}, {transform_indices = @transform_6, window_bounds = array<i64: 1, 32>}, {transform_indices = @transform_7, window_bounds = array<i64: 1, 32>}, {transform_indices = @transform_8, window_bounds = array<i64: 1, 32>}, {transform_indices = @transform_9, window_bounds = array<i64: 16, 32>}, {transform_indices = @transform_10, window_bounds = array<i64: 16, 32>}, {transform_indices = @transform_11, window_bounds = array<i64: 16, 32>}]} {
    %c0 = arith.constant 0 : index
    %c0_0 = arith.constant 0 : index
    %0 = vector.load %arg2[%c0, %c0_0] : memref<16x32xf32, #tpu.memory_space<vmem>>, vector<16x32xf32>
    %c0_1 = arith.constant 0 : index
    %c0_2 = arith.constant 0 : index
    %1 = vector.load %arg3[%c0_1, %c0_2] : memref<1x32xf32, #tpu.memory_space<vmem>>, vector<1x32xf32>
    %c0_3 = arith.constant 0 : index
    %c0_4 = arith.constant 0 : index
    %2 = vector.load %arg4[%c0_3, %c0_4] : memref<1x32xf32, #tpu.memory_space<vmem>>, vector<1x32xf32>
    %cst = arith.constant dense<0.000000e+00> : vector<16xf32>
    %3 = vector.multi_reduction <add>, %0, %cst [1] : vector<16x32xf32> to vector<16xf32>
    %4 = vector.shape_cast %3 : vector<16xf32> to vector<16x1xf32>
    %cst_5 = arith.constant 3.200000e+01 : f32
    %5 = vector.broadcast %cst_5 : f32 to vector<16x1xf32>
    %6 = arith.divf %4, %5 : vector<16x1xf32>
    %7 = vector.broadcast %6 : vector<16x1xf32> to vector<16x32xf32>
    %8 = arith.subf %0, %7 : vector<16x32xf32>
    %9 = arith.mulf %8, %8 : vector<16x32xf32>
    %cst_6 = arith.constant dense<0.000000e+00> : vector<16xf32>
    %10 = vector.multi_reduction <add>, %9, %cst_6 [1] : vector<16x32xf32> to vector<16xf32>
    %11 = vector.shape_cast %10 : vector<16xf32> to vector<16x1xf32>
    %cst_7 = arith.constant 3.200000e+01 : f32
    %12 = vector.broadcast %cst_7 : f32 to vector<16x1xf32>
    %13 = arith.divf %11, %12 : vector<16x1xf32>
    %14 = vector.broadcast %6 : vector<16x1xf32> to vector<16x32xf32>
    %15 = arith.subf %0, %14 : vector<16x32xf32>
    %cst_8 = arith.constant 9.99999974E-6 : f32
    %16 = vector.broadcast %cst_8 : f32 to vector<16x1xf32>
    %17 = arith.addf %13, %16 : vector<16x1xf32>
    %18 = math.rsqrt %17 : vector<16x1xf32>
    %19 = vector.broadcast %18 : vector<16x1xf32> to vector<16x32xf32>
    %20 = arith.mulf %15, %19 : vector<16x32xf32>
    %21 = vector.broadcast %1 : vector<1x32xf32> to vector<16x32xf32>
    %22 = arith.mulf %20, %21 : vector<16x32xf32>
    %23 = vector.broadcast %2 : vector<1x32xf32> to vector<16x32xf32>
    %24 = arith.addf %22, %23 : vector<16x32xf32>
    %c0_9 = arith.constant 0 : index
    %c0_10 = arith.constant 0 : index
    %25 = vector.load %arg5[%c0_9, %c0_10] : memref<32x32xf32, #tpu.memory_space<vmem>>, vector<32x32xf32>
    %cst_11 = arith.constant dense<0.000000e+00> : vector<16x32xf32>
    %26 = tpu.matmul %24, %25, %cst_11 {dimension_numbers = #tpu.dot_dimension_numbers<[1], [0], [0], [1], [0, 0, 1, 1], [], []>} : vector<16x32xf32>, vector<32x32xf32>, vector<16x32xf32> -> vector<16x32xf32>
    %c0_12 = arith.constant 0 : index
    %c0_13 = arith.constant 0 : index
    %27 = vector.load %arg8[%c0_12, %c0_13] : memref<1x32xf32, #tpu.memory_space<vmem>>, vector<1x32xf32>
    %28 = vector.broadcast %27 : vector<1x32xf32> to vector<16x32xf32>
    %29 = arith.addf %26, %28 : vector<16x32xf32>
    %c0_14 = arith.constant 0 : index
    %c0_15 = arith.constant 0 : index
    %30 = vector.load %arg11[%c0_14, %c0_15] : memref<16x32xf32, #tpu.memory_space<vmem>>, vector<16x32xf32>
    tpu.vector_store %arg11[%c0_14, %c0_15], %29 {strides = array<i32>} : memref<16x32xf32, #tpu.memory_space<vmem>>, vector<16x32xf32>,
    %c0_16 = arith.constant 0 : index
    %c0_17 = arith.constant 0 : index
    %31 = vector.load %arg6[%c0_16, %c0_17] : memref<32x32xf32, #tpu.memory_space<vmem>>, vector<32x32xf32>
    %cst_18 = arith.constant dense<0.000000e+00> : vector<16x32xf32>
    %32 = tpu.matmul %24, %31, %cst_18 {dimension_numbers = #tpu.dot_dimension_numbers<[1], [0], [0], [1], [0, 0, 1, 1], [], []>} : vector<16x32xf32>, vector<32x32xf32>, vector<16x32xf32> -> vector<16x32xf32>
    %c0_19 = arith.constant 0 : index
    %c0_20 = arith.constant 0 : index
    %33 = vector.load %arg9[%c0_19, %c0_20] : memref<1x32xf32, #tpu.memory_space<vmem>>, vector<1x32xf32>
    %34 = vector.broadcast %33 : vector<1x32xf32> to vector<16x32xf32>
    %35 = arith.addf %32, %34 : vector<16x32xf32>
    %c0_21 = arith.constant 0 : index
    %c0_22 = arith.constant 0 : index
    %36 = vector.load %arg12[%c0_21, %c0_22] : memref<16x32xf32, #tpu.memory_space<vmem>>, vector<16x32xf32>
    tpu.vector_store %arg12[%c0_21, %c0_22], %35 {strides = array<i32>} : memref<16x32xf32, #tpu.memory_space<vmem>>, vector<16x32xf32>,
    %c0_23 = arith.constant 0 : index
    %c0_24 = arith.constant 0 : index
    %37 = vector.load %arg7[%c0_23, %c0_24] : memref<32x32xf32, #tpu.memory_space<vmem>>, vector<32x32xf32>
    %cst_25 = arith.constant dense<0.000000e+00> : vector<16x32xf32>
    %38 = tpu.matmul %24, %37, %cst_25 {dimension_numbers = #tpu.dot_dimension_numbers<[1], [0], [0], [1], [0, 0, 1, 1], [], []>} : vector<16x32xf32>, vector<32x32xf32>, vector<16x32xf32> -> vector<16x32xf32>
    %c0_26 = arith.constant 0 : index
    %c0_27 = arith.constant 0 : index
    %39 = vector.load %arg10[%c0_26, %c0_27] : memref<1x32xf32, #tpu.memory_space<vmem>>, vector<1x32xf32>
    %40 = vector.broadcast %39 : vector<1x32xf32> to vector<16x32xf32>
    %41 = arith.addf %38, %40 : vector<16x32xf32>
    %c0_28 = arith.constant 0 : index
    %c0_29 = arith.constant 0 : index
    %42 = vector.load %arg13[%c0_28, %c0_29] : memref<16x32xf32, #tpu.memory_space<vmem>>, vector<16x32xf32>
    tpu.vector_store %arg13[%c0_28, %c0_29], %41 {strides = array<i32>} : memref<16x32xf32, #tpu.memory_space<vmem>>, vector<16x32xf32>,
    return
  }
  func.func @transform_0(%arg0: i32, %arg1: i32) -> (i32, i32) {
    %c0_i32 = arith.constant 0 : i32
    %c0_i32_0 = arith.constant 0 : i32
    return %arg0, %c0_i32 : i32, i32
  }
  func.func @transform_1(%arg0: i32, %arg1: i32) -> (i32, i32) {
    %c0_i32 = arith.constant 0 : i32
    %c0_i32_0 = arith.constant 0 : i32
    %c0_i32_1 = arith.constant 0 : i32
    return %c0_i32, %c0_i32_0 : i32, i32
  }
  func.func @transform_2(%arg0: i32, %arg1: i32) -> (i32, i32) {
    %c0_i32 = arith.constant 0 : i32
    %c0_i32_0 = arith.constant 0 : i32
    %c0_i32_1 = arith.constant 0 : i32
    return %c0_i32, %c0_i32_0 : i32, i32
  }
  func.func @transform_3(%arg0: i32, %arg1: i32) -> (i32, i32) {
    %c0_i32 = arith.constant 0 : i32
    %c0_i32_0 = arith.constant 0 : i32
    return %c0_i32, %arg1 : i32, i32
  }
  func.func @transform_4(%arg0: i32, %arg1: i32) -> (i32, i32) {
    %c0_i32 = arith.constant 0 : i32
    %c0_i32_0 = arith.constant 0 : i32
    return %c0_i32, %arg1 : i32, i32
  }
  func.func @transform_5(%arg0: i32, %arg1: i32) -> (i32, i32) {
    %c0_i32 = arith.constant 0 : i32
    %c0_i32_0 = arith.constant 0 : i32
    return %c0_i32, %arg1 : i32, i32
  }
  func.func @transform_6(%arg0: i32, %arg1: i32) -> (i32, i32) {
    %c0_i32 = arith.constant 0 : i32
    %c0_i32_0 = arith.constant 0 : i32
    return %c0_i32, %arg1 : i32, i32
  }
  func.func @transform_7(%arg0: i32, %arg1: i32) -> (i32, i32) {
    %c0_i32 = arith.constant 0 : i32
    %c0_i32_0 = arith.constant 0 : i32
    return %c0_i32, %arg1 : i32, i32
  }
  func.func @transform_8(%arg0: i32, %arg1: i32) -> (i32, i32) {
    %c0_i32 = arith.constant 0 : i32
    %c0_i32_0 = arith.constant 0 : i32
    return %c0_i32, %arg1 : i32, i32
  }
  func.func @transform_9(%arg0: i32, %arg1: i32) -> (i32, i32) {
    %c0_i32 = arith.constant 0 : i32
    return %arg0, %arg1 : i32, i32
  }
  func.func @transform_10(%arg0: i32, %arg1: i32) -> (i32, i32) {
    %c0_i32 = arith.constant 0 : i32
    return %arg0, %arg1 : i32, i32
  }
  func.func @transform_11(%arg0: i32, %arg1: i32) -> (i32, i32) {
    %c0_i32 = arith.constant 0 : i32
    return %arg0, %arg1 : i32, i32
  }
}

module attributes {stable_mosaic.version = 11 : i64} {
  func.func @_linear_residual_kernel(%arg0: i32, %arg1: i32, %arg2: i32, %arg3: memref<16x32xf32, #tpu.memory_space<vmem>>, %arg4: memref<32x32xf32, #tpu.memory_space<vmem>>, %arg5: memref<1x32xf32, #tpu.memory_space<vmem>>, %arg6: memref<16x32xf32, #tpu.memory_space<vmem>>, %arg7: memref<16x32xf32, #tpu.memory_space<vmem>>, %arg8: memref<16x32xf32, #tpu.memory_space<vmem>>) attributes {dimension_semantics = [#tpu.dimension_semantics<parallel>, #tpu.dimension_semantics<parallel>, #tpu.dimension_semantics<arbitrary>], iteration_bounds = array<i64: 1, 1, 1>, scalar_prefetch = 0 : i64, scratch_operands = 1 : i64, tpu.core_type = #tpu.core_type<tc>, window_params = [{transform_indices = @transform_0, window_bounds = array<i64: 16, 32>}, {transform_indices = @transform_1, window_bounds = array<i64: 32, 32>}, {transform_indices = @transform_2, window_bounds = array<i64: 1, 32>}, {transform_indices = @transform_3, window_bounds = array<i64: 16, 32>}, {transform_indices = @transform_4, window_bounds = array<i64: 16, 32>}]} {
    %c0_i32 = arith.constant 0 : i32
    %0 = arith.cmpi eq, %arg2, %c0_i32 : i32
    %1 = arith.extui %0 : i1 to i32
    %c0_i32_0 = arith.constant 0 : i32
    %2 = arith.cmpi ne, %1, %c0_i32_0 : i32
    scf.if %2 {
      %cst_10 = arith.constant 0.000000e+00 : f32
      %12 = vector.broadcast %cst_10 : f32 to vector<16x32xf32>
      %c0_11 = arith.constant 0 : index
      %c0_12 = arith.constant 0 : index
      %13 = vector.load %arg8[%c0_11, %c0_12] : memref<16x32xf32, #tpu.memory_space<vmem>>, vector<16x32xf32>
      tpu.vector_store %arg8[%c0_11, %c0_12], %12 {strides = array<i32>} : memref<16x32xf32, #tpu.memory_space<vmem>>, vector<16x32xf32>,
    } else {
    }
    %c0 = arith.constant 0 : index
    %c0_1 = arith.constant 0 : index
    %3 = vector.load %arg8[%c0, %c0_1] : memref<16x32xf32, #tpu.memory_space<vmem>>, vector<16x32xf32>
    %c0_2 = arith.constant 0 : index
    %c0_3 = arith.constant 0 : index
    %4 = vector.load %arg3[%c0_2, %c0_3] : memref<16x32xf32, #tpu.memory_space<vmem>>, vector<16x32xf32>
    %c0_4 = arith.constant 0 : index
    %c0_5 = arith.constant 0 : index
    %5 = vector.load %arg4[%c0_4, %c0_5] : memref<32x32xf32, #tpu.memory_space<vmem>>, vector<32x32xf32>
    %cst = arith.constant dense<0.000000e+00> : vector<16x32xf32>
    %6 = tpu.matmul %4, %5, %cst {dimension_numbers = #tpu.dot_dimension_numbers<[1], [0], [0], [1], [0, 0, 1, 1], [], []>} : vector<16x32xf32>, vector<32x32xf32>, vector<16x32xf32> -> vector<16x32xf32>
    %7 = arith.addf %3, %6 : vector<16x32xf32>
    %c0_6 = arith.constant 0 : index
    %c0_7 = arith.constant 0 : index
    %8 = vector.load %arg8[%c0_6, %c0_7] : memref<16x32xf32, #tpu.memory_space<vmem>>, vector<16x32xf32>
    tpu.vector_store %arg8[%c0_6, %c0_7], %7 {strides = array<i32>} : memref<16x32xf32, #tpu.memory_space<vmem>>, vector<16x32xf32>,
    %c0_i32_8 = arith.constant 0 : i32
    %9 = arith.cmpi eq, %arg2, %c0_i32_8 : i32
    %10 = arith.extui %9 : i1 to i32
    %c0_i32_9 = arith.constant 0 : i32
    %11 = arith.cmpi ne, %10, %c0_i32_9 : i32
    scf.if %11 {
      %c0_10 = arith.constant 0 : index
      %c0_11 = arith.constant 0 : index
      %12 = vector.load %arg8[%c0_10, %c0_11] : memref<16x32xf32, #tpu.memory_space<vmem>>, vector<16x32xf32>
      %c0_12 = arith.constant 0 : index
      %c0_13 = arith.constant 0 : index
      %13 = vector.load %arg5[%c0_12, %c0_13] : memref<1x32xf32, #tpu.memory_space<vmem>>, vector<1x32xf32>
      %14 = vector.broadcast %13 : vector<1x32xf32> to vector<16x32xf32>
      %15 = arith.addf %12, %14 : vector<16x32xf32>
      %c0_14 = arith.constant 0 : index
      %c0_15 = arith.constant 0 : index
      %16 = vector.load %arg6[%c0_14, %c0_15] : memref<16x32xf32, #tpu.memory_space<vmem>>, vector<16x32xf32>
      %17 = arith.addf %15, %16 : vector<16x32xf32>
      %c0_16 = arith.constant 0 : index
      %c0_17 = arith.constant 0 : index
      %18 = vector.load %arg7[%c0_16, %c0_17] : memref<16x32xf32, #tpu.memory_space<vmem>>, vector<16x32xf32>
      tpu.vector_store %arg7[%c0_16, %c0_17], %17 {strides = array<i32>} : memref<16x32xf32, #tpu.memory_space<vmem>>, vector<16x32xf32>,
    } else {
    }
    return
  }
  func.func @transform_0(%arg0: i32, %arg1: i32, %arg2: i32) -> (i32, i32) {
    %c0_i32 = arith.constant 0 : i32
    return %arg0, %arg2 : i32, i32
  }
  func.func @transform_1(%arg0: i32, %arg1: i32, %arg2: i32) -> (i32, i32) {
    %c0_i32 = arith.constant 0 : i32
    return %arg2, %arg1 : i32, i32
  }
  func.func @transform_2(%arg0: i32, %arg1: i32, %arg2: i32) -> (i32, i32) {
    %c0_i32 = arith.constant 0 : i32
    %c0_i32_0 = arith.constant 0 : i32
    return %c0_i32, %arg1 : i32, i32
  }
  func.func @transform_3(%arg0: i32, %arg1: i32, %arg2: i32) -> (i32, i32) {
    %c0_i32 = arith.constant 0 : i32
    return %arg0, %arg1 : i32, i32
  }
  func.func @transform_4(%arg0: i32, %arg1: i32, %arg2: i32) -> (i32, i32) {
    %c0_i32 = arith.constant 0 : i32
    return %arg0, %arg1 : i32, i32
  }
}

module attributes {stable_mosaic.version = 11 : i64} {
  func.func @_ln_linear_kernel(%arg0: i32, %arg1: i32, %arg2: memref<16x32xf32, #tpu.memory_space<vmem>>, %arg3: memref<1x32xf32, #tpu.memory_space<vmem>>, %arg4: memref<1x32xf32, #tpu.memory_space<vmem>>, %arg5: memref<32x128xf32, #tpu.memory_space<vmem>>, %arg6: memref<1x128xf32, #tpu.memory_space<vmem>>, %arg7: memref<16x128xf32, #tpu.memory_space<vmem>>) attributes {dimension_semantics = [#tpu.dimension_semantics<parallel>, #tpu.dimension_semantics<parallel>], iteration_bounds = array<i64: 1, 1>, scalar_prefetch = 0 : i64, scratch_operands = 0 : i64, tpu.core_type = #tpu.core_type<tc>, window_params = [{transform_indices = @transform_0, window_bounds = array<i64: 16, 32>}, {pipeline_mode = #tpu.pipeline_mode<synchronous>, transform_indices = @transform_1, window_bounds = array<i64: 1, 32>}, {pipeline_mode = #tpu.pipeline_mode<synchronous>, transform_indices = @transform_2, window_bounds = array<i64: 1, 32>}, {transform_indices = @transform_3, window_bounds = array<i64: 32, 128>}, {transform_indices = @transform_4, window_bounds = array<i64: 1, 128>}, {transform_indices = @transform_5, window_bounds = array<i64: 16, 128>}]} {
    %c0 = arith.constant 0 : index
    %c0_0 = arith.constant 0 : index
    %0 = vector.load %arg2[%c0, %c0_0] : memref<16x32xf32, #tpu.memory_space<vmem>>, vector<16x32xf32>
    %c0_1 = arith.constant 0 : index
    %c0_2 = arith.constant 0 : index
    %1 = vector.load %arg3[%c0_1, %c0_2] : memref<1x32xf32, #tpu.memory_space<vmem>>, vector<1x32xf32>
    %c0_3 = arith.constant 0 : index
    %c0_4 = arith.constant 0 : index
    %2 = vector.load %arg4[%c0_3, %c0_4] : memref<1x32xf32, #tpu.memory_space<vmem>>, vector<1x32xf32>
    %cst = arith.constant dense<0.000000e+00> : vector<16xf32>
    %3 = vector.multi_reduction <add>, %0, %cst [1] : vector<16x32xf32> to vector<16xf32>
    %4 = vector.shape_cast %3 : vector<16xf32> to vector<16x1xf32>
    %cst_5 = arith.constant 3.200000e+01 : f32
    %5 = vector.broadcast %cst_5 : f32 to vector<16x1xf32>
    %6 = arith.divf %4, %5 : vector<16x1xf32>
    %7 = vector.broadcast %6 : vector<16x1xf32> to vector<16x32xf32>
    %8 = arith.subf %0, %7 : vector<16x32xf32>
    %9 = arith.mulf %8, %8 : vector<16x32xf32>
    %cst_6 = arith.constant dense<0.000000e+00> : vector<16xf32>
    %10 = vector.multi_reduction <add>, %9, %cst_6 [1] : vector<16x32xf32> to vector<16xf32>
    %11 = vector.shape_cast %10 : vector<16xf32> to vector<16x1xf32>
    %cst_7 = arith.constant 3.200000e+01 : f32
    %12 = vector.broadcast %cst_7 : f32 to vector<16x1xf32>
    %13 = arith.divf %11, %12 : vector<16x1xf32>
    %14 = vector.broadcast %6 : vector<16x1xf32> to vector<16x32xf32>
    %15 = arith.subf %0, %14 : vector<16x32xf32>
    %cst_8 = arith.constant 9.99999974E-6 : f32
    %16 = vector.broadcast %cst_8 : f32 to vector<16x1xf32>
    %17 = arith.addf %13, %16 : vector<16x1xf32>
    %18 = math.rsqrt %17 : vector<16x1xf32>
    %19 = vector.broadcast %18 : vector<16x1xf32> to vector<16x32xf32>
    %20 = arith.mulf %15, %19 : vector<16x32xf32>
    %21 = vector.broadcast %1 : vector<1x32xf32> to vector<16x32xf32>
    %22 = arith.mulf %20, %21 : vector<16x32xf32>
    %23 = vector.broadcast %2 : vector<1x32xf32> to vector<16x32xf32>
    %24 = arith.addf %22, %23 : vector<16x32xf32>
    %c0_9 = arith.constant 0 : index
    %c0_10 = arith.constant 0 : index
    %25 = vector.load %arg5[%c0_9, %c0_10] : memref<32x128xf32, #tpu.memory_space<vmem>>, vector<32x128xf32>
    %cst_11 = arith.constant dense<0.000000e+00> : vector<16x128xf32>
    %26 = tpu.matmul %24, %25, %cst_11 {dimension_numbers = #tpu.dot_dimension_numbers<[1], [0], [0], [1], [0, 0, 1, 1], [], []>} : vector<16x32xf32>, vector<32x128xf32>, vector<16x128xf32> -> vector<16x128xf32>
    %c0_12 = arith.constant 0 : index
    %c0_13 = arith.constant 0 : index
    %27 = vector.load %arg6[%c0_12, %c0_13] : memref<1x128xf32, #tpu.memory_space<vmem>>, vector<1x128xf32>
    %28 = vector.broadcast %27 : vector<1x128xf32> to vector<16x128xf32>
    %29 = arith.addf %26, %28 : vector<16x128xf32>
    %cst_14 = arith.constant 0.000000e+00 : f32
    %30 = vector.broadcast %cst_14 : f32 to vector<16x128xf32>
    %31 = arith.maximumf %29, %30 : vector<16x128xf32>
    %c0_15 = arith.constant 0 : index
    %c0_16 = arith.constant 0 : index
    %32 = vector.load %arg7[%c0_15, %c0_16] : memref<16x128xf32, #tpu.memory_space<vmem>>, vector<16x128xf32>
    tpu.vector_store %arg7[%c0_15, %c0_16], %31 {strides = array<i32>} : memref<16x128xf32, #tpu.memory_space<vmem>>, vector<16x128xf32>,
    return
  }
  func.func @transform_0(%arg0: i32, %arg1: i32) -> (i32, i32) {
    %c0_i32 = arith.constant 0 : i32
    %c0_i32_0 = arith.constant 0 : i32
    return %arg0, %c0_i32 : i32, i32
  }
  func.func @transform_1(%arg0: i32, %arg1: i32) -> (i32, i32) {
    %c0_i32 = arith.constant 0 : i32
    %c0_i32_0 = arith.constant 0 : i32
    %c0_i32_1 = arith.constant 0 : i32
    return %c0_i32, %c0_i32_0 : i32, i32
  }
  func.func @transform_2(%arg0: i32, %arg1: i32) -> (i32, i32) {
    %c0_i32 = arith.constant 0 : i32
    %c0_i32_0 = arith.constant 0 : i32
    %c0_i32_1 = arith.constant 0 : i32
    return %c0_i32, %c0_i32_0 : i32, i32
  }
  func.func @transform_3(%arg0: i32, %arg1: i32) -> (i32, i32) {
    %c0_i32 = arith.constant 0 : i32
    %c0_i32_0 = arith.constant 0 : i32
    return %c0_i32, %arg1 : i32, i32
  }
  func.func @transform_4(%arg0: i32, %arg1: i32) -> (i32, i32) {
    %c0_i32 = arith.constant 0 : i32
    %c0_i32_0 = arith.constant 0 : i32
    return %c0_i32, %arg1 : i32, i32
  }
  func.func @transform_5(%arg0: i32, %arg1: i32) -> (i32, i32) {
    %c0_i32 = arith.constant 0 : i32
    return %arg0, %arg1 : i32, i32
  }
}

module attributes {stable_mosaic.version = 11 : i64} {
  func.func @_linear_residual_kernel(%arg0: i32, %arg1: i32, %arg2: i32, %arg3: memref<16x128xf32, #tpu.memory_space<vmem>>, %arg4: memref<128x32xf32, #tpu.memory_space<vmem>>, %arg5: memref<1x32xf32, #tpu.memory_space<vmem>>, %arg6: memref<16x32xf32, #tpu.memory_space<vmem>>, %arg7: memref<16x32xf32, #tpu.memory_space<vmem>>, %arg8: memref<16x32xf32, #tpu.memory_space<vmem>>) attributes {dimension_semantics = [#tpu.dimension_semantics<parallel>, #tpu.dimension_semantics<parallel>, #tpu.dimension_semantics<arbitrary>], iteration_bounds = array<i64: 1, 1, 1>, scalar_prefetch = 0 : i64, scratch_operands = 1 : i64, tpu.core_type = #tpu.core_type<tc>, window_params = [{transform_indices = @transform_0, window_bounds = array<i64: 16, 128>}, {transform_indices = @transform_1, window_bounds = array<i64: 128, 32>}, {transform_indices = @transform_2, window_bounds = array<i64: 1, 32>}, {transform_indices = @transform_3, window_bounds = array<i64: 16, 32>}, {transform_indices = @transform_4, window_bounds = array<i64: 16, 32>}]} {
    %c0_i32 = arith.constant 0 : i32
    %0 = arith.cmpi eq, %arg2, %c0_i32 : i32
    %1 = arith.extui %0 : i1 to i32
    %c0_i32_0 = arith.constant 0 : i32
    %2 = arith.cmpi ne, %1, %c0_i32_0 : i32
    scf.if %2 {
      %cst_10 = arith.constant 0.000000e+00 : f32
      %12 = vector.broadcast %cst_10 : f32 to vector<16x32xf32>
      %c0_11 = arith.constant 0 : index
      %c0_12 = arith.constant 0 : index
      %13 = vector.load %arg8[%c0_11, %c0_12] : memref<16x32xf32, #tpu.memory_space<vmem>>, vector<16x32xf32>
      tpu.vector_store %arg8[%c0_11, %c0_12], %12 {strides = array<i32>} : memref<16x32xf32, #tpu.memory_space<vmem>>, vector<16x32xf32>,
    } else {
    }
    %c0 = arith.constant 0 : index
    %c0_1 = arith.constant 0 : index
    %3 = vector.load %arg8[%c0, %c0_1] : memref<16x32xf32, #tpu.memory_space<vmem>>, vector<16x32xf32>
    %c0_2 = arith.constant 0 : index
    %c0_3 = arith.constant 0 : index
    %4 = vector.load %arg3[%c0_2, %c0_3] : memref<16x128xf32, #tpu.memory_space<vmem>>, vector<16x128xf32>
    %c0_4 = arith.constant 0 : index
    %c0_5 = arith.constant 0 : index
    %5 = vector.load %arg4[%c0_4, %c0_5] : memref<128x32xf32, #tpu.memory_space<vmem>>, vector<128x32xf32>
    %cst = arith.constant dense<0.000000e+00> : vector<16x32xf32>
    %6 = tpu.matmul %4, %5, %cst {dimension_numbers = #tpu.dot_dimension_numbers<[1], [0], [0], [1], [0, 0, 1, 1], [], []>} : vector<16x128xf32>, vector<128x32xf32>, vector<16x32xf32> -> vector<16x32xf32>
    %7 = arith.addf %3, %6 : vector<16x32xf32>
    %c0_6 = arith.constant 0 : index
    %c0_7 = arith.constant 0 : index
    %8 = vector.load %arg8[%c0_6, %c0_7] : memref<16x32xf32, #tpu.memory_space<vmem>>, vector<16x32xf32>
    tpu.vector_store %arg8[%c0_6, %c0_7], %7 {strides = array<i32>} : memref<16x32xf32, #tpu.memory_space<vmem>>, vector<16x32xf32>,
    %c0_i32_8 = arith.constant 0 : i32
    %9 = arith.cmpi eq, %arg2, %c0_i32_8 : i32
    %10 = arith.extui %9 : i1 to i32
    %c0_i32_9 = arith.constant 0 : i32
    %11 = arith.cmpi ne, %10, %c0_i32_9 : i32
    scf.if %11 {
      %c0_10 = arith.constant 0 : index
      %c0_11 = arith.constant 0 : index
      %12 = vector.load %arg8[%c0_10, %c0_11] : memref<16x32xf32, #tpu.memory_space<vmem>>, vector<16x32xf32>
      %c0_12 = arith.constant 0 : index
      %c0_13 = arith.constant 0 : index
      %13 = vector.load %arg5[%c0_12, %c0_13] : memref<1x32xf32, #tpu.memory_space<vmem>>, vector<1x32xf32>
      %14 = vector.broadcast %13 : vector<1x32xf32> to vector<16x32xf32>
      %15 = arith.addf %12, %14 : vector<16x32xf32>
      %c0_14 = arith.constant 0 : index
      %c0_15 = arith.constant 0 : index
      %16 = vector.load %arg6[%c0_14, %c0_15] : memref<16x32xf32, #tpu.memory_space<vmem>>, vector<16x32xf32>
      %17 = arith.addf %15, %16 : vector<16x32xf32>
      %c0_16 = arith.constant 0 : index
      %c0_17 = arith.constant 0 : index
      %18 = vector.load %arg7[%c0_16, %c0_17] : memref<16x32xf32, #tpu.memory_space<vmem>>, vector<16x32xf32>
      tpu.vector_store %arg7[%c0_16, %c0_17], %17 {strides = array<i32>} : memref<16x32xf32, #tpu.memory_space<vmem>>, vector<16x32xf32>,
    } else {
    }
    return
  }
  func.func @transform_0(%arg0: i32, %arg1: i32, %arg2: i32) -> (i32, i32) {
    %c0_i32 = arith.constant 0 : i32
    return %arg0, %arg2 : i32, i32
  }
  func.func @transform_1(%arg0: i32, %arg1: i32, %arg2: i32) -> (i32, i32) {
    %c0_i32 = arith.constant 0 : i32
    return %arg2, %arg1 : i32, i32
  }
  func.func @transform_2(%arg0: i32, %arg1: i32, %arg2: i32) -> (i32, i32) {
    %c0_i32 = arith.constant 0 : i32
    %c0_i32_0 = arith.constant 0 : i32
    return %c0_i32, %arg1 : i32, i32
  }
  func.func @transform_3(%arg0: i32, %arg1: i32, %arg2: i32) -> (i32, i32) {
    %c0_i32 = arith.constant 0 : i32
    return %arg0, %arg1 : i32, i32
  }
  func.func @transform_4(%arg0: i32, %arg1: i32, %arg2: i32) -> (i32, i32) {
    %c0_i32 = arith.constant 0 : i32
    return %arg0, %arg1 : i32, i32
  }
}

</mosaic_0001>

<bundles_post_ra>
// kernel: transformer_encoder_layer.5
= control target key start
LH: loop header
LB: loop body
LE: loop exit
PB: predicated region body
PF: predicated region fallthrough
CT: control target
= control target key end

     0   :  { %17 = vsyncpa [#allocation3], 0  ;;  %s932_s0 = inlined_call_operand.hbm [shape: f32[16,32], index: 0, kind: input, shape index: {}]   ;;  %s933_s1 = inlined_call_operand.hbm [shape: f32[1,32], index: 1, kind: input, shape index: {}]   ;;  %s934_s2 = inlined_call_operand.hbm [shape: f32[1,32], index: 2, kind: input, shape index: {}]   ;;  %s935_s3 = inlined_call_operand.vmem [shape: f32[32,32], index: 3, kind: input, shape index: {}]   ;;  %s936_s4 = inlined_call_operand.hbm [shape: f32[32,32], index: 4, kind: input, shape index: {}]   ;;  %s937_s5 = inlined_call_operand.vmem [shape: f32[32,32], index: 5, kind: input, shape index: {}]   ;;  %s938_s6 = inlined_call_operand.hbm [shape: f32[1,32], index: 6, kind: input, shape index: {}]   ;;  %s939_s7 = inlined_call_operand.hbm [shape: f32[1,32], index: 7, kind: input, shape index: {}]   ;;  %s940_s8 = inlined_call_operand.hbm [shape: f32[1,32], index: 8, kind: input, shape index: {}]   ;;  %s941_s9 = inlined_call_operand.vmem [shape: f32[16,32], index: 9, kind: output, shape index: {0}]   ;;  %s942_s10 = inlined_call_operand.vmem [shape: f32[16,32], index: 10, kind: output, shape index: {1}]   ;;  %s943_s11 = inlined_call_operand.vmem [shape: f32[16,32], index: 11, kind: output, shape index: {2}]  }
   0x1   :  { %18 = vsyncpa [#allocation5], 0 }
   0x2   :  { %19 = vsyncpa [#allocation8], 0 }
   0x3   :  { %20 = vsyncpa [#allocation11], 0  ;;  %s715_s17 = smov [#allocation4]   ;;  %s553_s21 = scalar_lea.hbm %s933_s1, 16 }
   0x4   :  { %s39_s18 = sshll.u32 %s715_s17, 4  ;;  %p554_p0 = scmp.ne.s32.totalorder %s933_s1, %s553_s21  ;;  %s40_s18 = int_to_ptr.vmem [resolvable:$true] %s39_s18 }
   0x5   :  { %p557_p1 = scmp.lt.u32.totalorder %s553_s21, %s933_s1 }
   0x7   :  { %p559_p2 = pnand %p557_p1, %p554_p0 }
   0x9   :  { %562 = shalt.err (!%p559_p2)
}
   0xa   :  { %s563_s26 = scalar_lea.vmem %s40_s18, 16  ;;  %s567_s27 = scalar_lea.vmem %s40_s18, 32 }
   0xb   :  { %p564_p3 = scmp.ne.s32.totalorder %s40_s18, %s563_s26  ;;  %p568_p4 = scmp.lt.s32.totalorder %s40_s18, %s40_s18 }
   0xc   :  { %p569_p5 = scmp.lt.s32.totalorder %s567_s27, %s563_s26 }
   0xe   :  { %p570_p6 = por %p569_p5, %p568_p4 }
  0x10   :  { %p571_p7 = pnand %p570_p6, %p564_p3 }
  0x12   :  { %574 = shalt.err (!%p571_p7)
}
  0x13   :  { %42 = dma.hbm_to_vmem [thread:$0]  %s933_s1, 16, %s40_s18, [#allocation5]  }
  0x14   :  { %s716_s30 = smov [#allocation7]   ;;  %s717_s13 = smov [#allocation10]  }
  0x15   :  { %s60_s12 = sshll.u32 %s716_s30, 4  ;;  %s85_s14 = sshll.u32 %s717_s13, 4  ;;  %s61_s12 = int_to_ptr.vmem [resolvable:$true] %s60_s12  ;;  %s86_s14 = int_to_ptr.vmem [resolvable:$true] %s85_s14 }
  0x16   :  { %s575_s17 = scalar_lea.hbm %s936_s4, 512 }
  0x17   :  { %p576_p8 = scmp.ne.s32.totalorder %s936_s4, %s575_s17  ;;  %p579_p9 = scmp.lt.u32.totalorder %s575_s17, %s936_s4 }
  0x19   :  { %p581_p10 = pnand %p579_p9, %p576_p8 }
  0x1b   :  { %584 = shalt.err (!%p581_p10)
}
  0x1c   :  { %s585_s1 = scalar_lea.vmem %s61_s12, 512  ;;  %p590_p12 = scmp.lt.s32.totalorder %s61_s12, %s61_s12 }
  0x1d   :  { %p586_p11 = scmp.ne.s32.totalorder %s61_s12, %s585_s1  ;;  %p591_p13 = scmp.lt.s32.totalorder %s585_s1, %s585_s1 }
  0x1f   :  { %p592_p0 = por %p591_p13, %p590_p12 }
  0x21   :  { %p593_p1 = pnand %p592_p0, %p586_p11 }
  0x23   :  { %596 = shalt.err (!%p593_p1)
}
  0x24   :  { %s718_s18 = smov 128   ;;  %s719_s23 = smov 8  }
  0x25   :  { %66 = dma.hbm_to_vmem [thread:$0]  %s936_s4, 512, %s61_s12, [#allocation8], %s718_s18, %s718_s18, %s719_s23  }
  0x26   :  { %s597_s28 = scalar_lea.hbm %s939_s7, 16 }
  0x27   :  { %p598_p2 = scmp.ne.s32.totalorder %s939_s7, %s597_s28  ;;  %p601_p3 = scmp.lt.u32.totalorder %s597_s28, %s939_s7 }
  0x29   :  { %p603_p4 = pnand %p601_p3, %p598_p2 }
  0x2b   :  { %606 = shalt.err (!%p603_p4)
}
  0x2c   :  { %s607_s16 = scalar_lea.vmem %s86_s14, 16  ;;  %s611_s17 = scalar_lea.vmem %s86_s14, 32 }
  0x2d   :  { %p608_p5 = scmp.ne.s32.totalorder %s86_s14, %s607_s16  ;;  %p612_p6 = scmp.lt.s32.totalorder %s86_s14, %s86_s14 }
  0x2e   :  { %p613_p7 = scmp.lt.s32.totalorder %s611_s17, %s607_s16 }
  0x30   :  { %p614_p8 = por %p613_p7, %p612_p6 }
  0x32   :  { %p615_p9 = pnand %p614_p8, %p608_p5 }
  0x34   :  { %618 = shalt.err (!%p615_p9)
}
  0x35   :  { %88 = dma.hbm_to_vmem [thread:$0]  %s939_s7, 16, %s86_s14, [#allocation11]  }
  0x36   :  { %s720_s19 = smov [#allocation2]   ;;  %s721_s21 = smov [#allocation6]  }
  0x37   :  { %s26_s20 = sshll.u32 %s720_s19, 4  ;;  %s49_s22 = sshll.u32 %s721_s21, 4  ;;  %s27_s20 = int_to_ptr.vmem [resolvable:$true] %s26_s20  ;;  %s50_s22 = int_to_ptr.vmem [resolvable:$true] %s49_s22 }
  0x38   :  { %s619_s25 = scalar_lea.hbm %s932_s0, 256 }
  0x39   :  { %p620_p10 = scmp.ne.s32.totalorder %s932_s0, %s619_s25  ;;  %p623_p11 = scmp.lt.u32.totalorder %s619_s25, %s932_s0 }
  0x3b   :  { %p625_p12 = pnand %p623_p11, %p620_p10 }
  0x3d   :  { %628 = shalt.err (!%p625_p12)
}
  0x3e   :  { %s629_s7 = scalar_lea.vmem %s27_s20, 256  ;;  %p634_p0 = scmp.lt.s32.totalorder %s27_s20, %s27_s20 }
  0x3f   :  { %p630_p13 = scmp.ne.s32.totalorder %s27_s20, %s629_s7  ;;  %p635_p1 = scmp.lt.s32.totalorder %s629_s7, %s629_s7 }
  0x41   :  { %p636_p2 = por %p635_p1, %p634_p0 }
  0x43   :  { %p637_p3 = pnand %p636_p2, %p630_p13 }
  0x45   :  { %640 = shalt.err (!%p637_p3)
}
  0x46   :  { %32 = dma.hbm_to_vmem [thread:$0]  %s932_s0, 256, %s27_s20, [#allocation3], %s718_s18, %s718_s18, %s719_s23  }
  0x47   :  { %s641_s16 = scalar_lea.hbm %s934_s2, 16 }
  0x48   :  { %p642_p4 = scmp.ne.s32.totalorder %s934_s2, %s641_s16  ;;  %p645_p5 = scmp.lt.u32.totalorder %s641_s16, %s934_s2 }
  0x4a   :  { %p647_p6 = pnand %p645_p5, %p642_p4 }
  0x4c   :  { %650 = shalt.err (!%p647_p6)
}
  0x4d   :  { %s651_s21 = scalar_lea.vmem %s50_s22, 16  ;;  %s655_s1 = scalar_lea.vmem %s50_s22, 32 }
  0x4e   :  { %p652_p7 = scmp.ne.s32.totalorder %s50_s22, %s651_s21  ;;  %p656_p8 = scmp.lt.s32.totalorder %s50_s22, %s50_s22 }
  0x4f   :  { %p657_p9 = scmp.lt.s32.totalorder %s655_s1, %s651_s21 }
  0x51   :  { %p658_p10 = por %p657_p9, %p656_p8 }
  0x53   :  { %p659_p11 = pnand %p658_p10, %p652_p7 }
  0x55   :  { %662 = shalt.err (!%p659_p11)
}
  0x56   :  { %52 = dma.hbm_to_vmem [thread:$0]  %s934_s2, 16, %s50_s22, [#allocation5]  }
  0x57   :  { %s722_s23 = smov [#allocation9]   ;;  %s723_s24 = smov [#allocation12]  }
  0x58   :  { %s75_s20 = sshll.u32 %s722_s23, 4  ;;  %s95_s25 = sshll.u32 %s723_s24, 4  ;;  %s76_s20 = int_to_ptr.vmem [resolvable:$true] %s75_s20  ;;  %s96_s25 = int_to_ptr.vmem [resolvable:$true] %s95_s25 }
  0x59   :  { %s663_s28 = scalar_lea.hbm %s938_s6, 16 }
  0x5a   :  { %p664_p12 = scmp.ne.s32.totalorder %s938_s6, %s663_s28  ;;  %p667_p13 = scmp.lt.u32.totalorder %s663_s28, %s938_s6 }
  0x5c   :  { %p669_p0 = pnand %p667_p13, %p664_p12 }
  0x5e   :  { %672 = shalt.err (!%p669_p0)
}
  0x5f   :  { %s673_s2 = scalar_lea.vmem %s76_s20, 16  ;;  %s677_s22 = scalar_lea.vmem %s76_s20, 32 }
  0x60   :  { %p674_p1 = scmp.ne.s32.totalorder %s76_s20, %s673_s2  ;;  %p678_p2 = scmp.lt.s32.totalorder %s76_s20, %s76_s20 }
  0x61   :  { %p679_p3 = scmp.lt.s32.totalorder %s677_s22, %s673_s2 }
  0x63   :  { %p680_p4 = por %p679_p3, %p678_p2 }
  0x65   :  { %p681_p5 = pnand %p680_p4, %p674_p1 }
  0x67   :  { %684 = shalt.err (!%p681_p5)
}
  0x68   :  { %78 = dma.hbm_to_vmem [thread:$0]  %s938_s6, 16, %s76_s20, [#allocation8]  }
  0x69   :  { %s685_s4 = scalar_lea.hbm %s940_s8, 16 }
  0x6a   :  { %p686_p6 = scmp.ne.s32.totalorder %s940_s8, %s685_s4  ;;  %p689_p7 = scmp.lt.u32.totalorder %s685_s4, %s940_s8 }
  0x6c   :  { %p691_p8 = pnand %p689_p7, %p686_p6 }
  0x6e   :  { %694 = shalt.err (!%p691_p8)
}
  0x6f   :  { %s695_s0 = scalar_lea.vmem %s96_s25, 16  ;;  %s699_s18 = scalar_lea.vmem %s96_s25, 32 }
  0x70   :  { %p696_p9 = scmp.ne.s32.totalorder %s96_s25, %s695_s0  ;;  %p700_p10 = scmp.lt.s32.totalorder %s96_s25, %s96_s25 }
  0x71   :  { %p701_p11 = scmp.lt.s32.totalorder %s699_s18, %s695_s0 }
  0x73   :  { %p702_p12 = por %p701_p11, %p700_p10 }
  0x75   :  { %p703_p13 = pnand %p702_p12, %p696_p9 }
  0x77   :  { %706 = shalt.err (!%p703_p13)
}
  0x78   :  { %98 = dma.hbm_to_vmem [thread:$0]  %s940_s8, 16, %s96_s25, [#allocation11]  }
  0x79   :  { %707 = dma.done.wait [#allocation3], 256  }
  0x7a   :  { %708 = vsyncadd [#allocation3], 4294967040 }
  0x7b   :  { %709 = dma.done.wait [#allocation5], 32  }
  0x7c   :  { %710 = vsyncadd [#allocation5], 4294967264 }
  0x7d   :  { %711 = dma.done.wait [#allocation8], 528  }
  0x7e   :  { %712 = vsyncadd [#allocation8], 4294966768 }
  0x7f   :  { %713 = dma.done.wait [#allocation11], 32  }
  0x80   :  { %714 = vsyncadd [#allocation11], 4294967264  ;;  %vm124_vm0 = vcmask 261120   ;;  %v120_v0 = vld [vmem:[#allocation2] sm:$0xff]  ;;  %v121_v1 = vld [vmem:[#allocation2 + $0x8] sm:$0xff] }
  0x81   :  { %v125_v2 = vsel %vm124_vm0, %v120_v0, 0.0  ;;  %v128_v3 = vsel %vm124_vm0, %v121_v1, 0.0  ;;  %v168_v14 = vld [vmem:[%s935_s3] sm:$0xff]  ;;  %v169_v15 = vld [vmem:[%s935_s3 + $0x8] sm:$0xff]  ;;  %v262_v16 = vld [vmem:[#allocation7] sm:$0xff] }
  0x82   :  { %126 = vadd.xlane.f32.xlu0 %v125_v2  ;;  %v516_v17 = vpack.c.bf16 %v169_v15, %v168_v14  ;;  %v263_v18 = vld [vmem:[#allocation7 + $0x8] sm:$0xff]  ;;  %v170_v19 = vld [vmem:[%s935_s3 + $0x10] sm:$0xff]  ;;  %v264_v23 = vld [vmem:[#allocation7 + $0x10] sm:$0xff] }
  0x83   :  { %v171_v20 = vld [vmem:[%s935_s3 + $0x18] sm:$0xff]  ;;  %v524_v21 = vpack.c.bf16 %v263_v18, %v262_v16  ;;  %v265_v24 = vld [vmem:[#allocation7 + $0x18] sm:$0xff]  ;;  %v350_v26 = vld [vmem:[%s937_s5] sm:$0xff] }
  0x84   :  { %v520_v22 = vpack.c.bf16 %v171_v20, %v170_v19  ;;  %517 = vmatprep.subr.bf16.mxu0 %v516_v17  ;;  %v528_v25 = vpack.c.bf16 %v265_v24, %v264_v23  ;;  %v351_v27 = vld [vmem:[%s937_s5 + $0x8] sm:$0xff]  ;;  %v454_v36 = vld [vmem:[#allocation4] ss:$0 sm:$0xff]  ;;  %v455_v38 = vld [vmem:[#allocation6] ss:$0 sm:$0xff] }
  0x85   :  { %519 = vmatpush3.bf16.msra.mxu0 %v516_v17  ;;  %525 = vmatprep.subr.bf16.mxu1 %v524_v21  ;;  %v532_v28 = vpack.c.bf16 %v351_v27, %v350_v26  ;;  %v352_v43 = vld [vmem:[%s937_s5 + $0x10] sm:$0xff]  ;;  %v353_v44 = vld [vmem:[%s937_s5 + $0x18] sm:$0xff] }
  0x86   :  { %129 = vadd.xlane.f32.xlu0 %v128_v3  ;;  %527 = vmatpush3.bf16.msra.mxu1 %v524_v21  ;;  %v536_v47 = vpack.c.bf16 %v353_v44, %v352_v43  ;;  %v456_v48 = vld [vmem:[#allocation9] ss:$0 sm:$0xff]  ;;  %v459_v49 = vld [vmem:[#allocation10] ss:$0 sm:$0xff]  ;;  %v462_v58 = vld [vmem:[#allocation12] ss:$0 sm:$0xff] }
  0x87   :  { %521 = vmatprep.subr.bf16.mxu0 %v520_v22  ;;  %529 = vmatprep.subr.bf16.mxu1 %v528_v25 }
  0x89   :  { %523 = vmatpush3.bf16.msra.mxu0 %v520_v22 }
  0x8a   :  { %531 = vmatpush3.bf16.msra.mxu1 %v528_v25  ;;  %533 = vmatprep.subr.bf16.mxu0 %v532_v28 }
 0x10f   :  { %v127_v4 = vpop.xlane.xlu0 %126 }
 0x110   :  { %v132_v5 = vmul.f32 0.03125, %v127_v4 }
 0x112   :  { %v134_v6 = vsub.f32 %v120_v0, %v132_v5 }
 0x113   :  { %v130_v7 = vpop.xlane.xlu0 %129 }
 0x114   :  { %v133_v8 = vmul.f32 0.03125, %v130_v7  ;;  %v136_v9 = vmul.f32 %v134_v6, %v134_v6 }
 0x116   :  { %v135_v10 = vsub.f32 %v121_v1, %v133_v8  ;;  %v138_v11 = vsel %vm124_vm0, %v136_v9, 0.0 }
 0x117   :  { %139 = vadd.xlane.f32.xlu1 %v138_v11 }
 0x118   :  { %v137_v12 = vmul.f32 %v135_v10, %v135_v10 }
 0x11a   :  { %v141_v13 = vsel %vm124_vm0, %v137_v12, 0.0 }
 0x11b   :  { %142 = vadd.xlane.f32.xlu1 %v141_v13 }
 0x1a4   :  { %v140_v29 = vpop.xlane.xlu1 %139 }
 0x1a5   :  { %v144_v30 = vmul.f32 0.03125, %v140_v29 }
 0x1a7   :  { %v146_v31 = vadd.f32 1e-05, %v144_v30 }
 0x1a8   :  { %v143_v32 = vpop.xlane.xlu1 %142 }
 0x1a9   :  { %549 = vrsqrt.f32 %v146_v31  ;;  %v145_v33 = vmul.f32 0.03125, %v143_v32 }
 0x1ab   :  { %v147_v34 = vadd.f32 1e-05, %v145_v33 }
 0x1ad   :  { %551 = vrsqrt.f32 %v147_v34 }
 0x1b3   :  { %v550_v35 = vpop.eup %549 }
 0x1b4   :  { %v150_v37 = vmul.f32 %v550_v35, %v134_v6 }
 0x1b6   :  { %v158_v39 = vmul.f32 %v454_v36, %v150_v37 }
 0x1b7   :  { %v552_v40 = vpop.eup %551 }
 0x1b8   :  { %v151_v41 = vmul.f32 %v552_v40, %v135_v10  ;;  %v166_v42 = vadd.f32 %v455_v38, %v158_v39 }
 0x1ba   :  { %v159_v45 = vmul.f32 %v454_v36, %v151_v41  ;;  %491 = vmatprep.mubr.msk.f32.mxu0 %vm124_vm0, %v166_v42  ;;  %502 = vmatprep.mubr.msk.f32.mxu1 %vm124_vm0, %v166_v42 }
 0x1bc   :  { %v167_v46 = vadd.f32 %v455_v38, %v159_v45 }
 0x1be   :  { %492 = vmatmul.mubr.msk.f32.vlgmr.msra.gmra.mrb[0].mxu0 %vm124_vm0, %v167_v46  ;;  %503 = vmatmul.mubr.msk.f32.vlgmr.msra.gmra.mrb[0].mxu1 %vm124_vm0, %v167_v46 }
 0x1bf   :  { %535 = vmatpush3.bf16.msra.mxu0 %v532_v28  ;;  %513 = vmatprep.mubr.msk.f32.mxu0 %vm124_vm0, %v166_v42 }
 0x1c0   :  { %537 = vmatprep.subr.bf16.mxu0 %v536_v47 }
 0x1c3   :  { %539 = vmatpush3.bf16.msra.mxu0 %v536_v47 }
 0x1c6   :  { %514 = vmatmul.mubr.msk.f32.vlgmr.msra.gmra.mrb[2].mxu0 %vm124_vm0, %v167_v46 }
 0x291   :  { %v493_v50 = vpop.f32.mrb[0].mxu0  ;;  %v504_v51 = vpop.f32.mrb[0].mxu1 }
 0x292   :  { %v257_v52 = vadd.f32 %v493_v50, %v456_v48  ;;  %v345_v53 = vadd.f32 %v504_v51, %v459_v49  ;;  %v251_v54 = vpop.f32.mrb[1].mxu0  ;;  %v339_v55 = vpop.f32.mrb[1].mxu1 }
 0x293   :  { %v252_v56 = vadd.f32 %v456_v48, %v251_v54  ;;  %v340_v57 = vadd.f32 %v459_v49, %v339_v55 }
 0x294   :  { %261 = vst.msk [vmem:[%s941_s9 + $0x8] sm:$0xff] %vm124_vm0, %v257_v52  ;;  %349 = vst.msk [vmem:[%s942_s10 + $0x8] sm:$0xff] %vm124_vm0, %v345_v53 }
 0x295   :  { %260 = vst.msk [vmem:[%s941_s9] sm:$0xff] %vm124_vm0, %v252_v56  ;;  %348 = vst.msk [vmem:[%s942_s10] sm:$0xff] %vm124_vm0, %v340_v57 }
 0x299   :  { %v515_v59 = vpop.f32.mrb[2].mxu0 }
 0x29a   :  { %v433_v60 = vadd.f32 %v515_v59, %v462_v58  ;;  %v427_v61 = vpop.f32.mrb[3].mxu0 }
 0x29b   :  { %v428_v62 = vadd.f32 %v462_v58, %v427_v61 }
 0x29c   :  { %437 = vst.msk [vmem:[%s943_s11 + $0x8] sm:$0xff] %vm124_vm0, %v433_v60 }
 0x29d   :  { %436 = vst.msk [vmem:[%s943_s11] sm:$0xff] %vm124_vm0, %v428_v62 }
 0x29e   :  { %450 = vsyncpa [#allocation3], 1 }
 0x29f   :  { %451 = vsyncpa [#allocation5], 1 }
 0x2a0   :  { %452 = vsyncpa [#allocation8], 1 }
 0x2a1   :  { %453 = vsyncpa [#allocation11], 1 }

// kernel: transformer_encoder_layer.7
= control target key start
LH: loop header
LB: loop body
LE: loop exit
PB: predicated region body
PF: predicated region fallthrough
CT: control target
= control target key end

     0   :  { %vm21_vm0 = vcmask 261120   ;;  %v171_v3 = vmov 0.0   ;;  %s238_s1 = inlined_call_operand.vmem [shape: f32[32,32], index: 1, kind: input, shape index: {}]   ;;  %s239_s0 = inlined_call_operand.vmem [shape: f32[16,32], index: 0, kind: input, shape index: {}]   ;;  %s240_s2 = inlined_call_operand.vmem [shape: f32[1,32], index: 2, kind: input, shape index: {}]   ;;  %s241_s3 = inlined_call_operand.vmem [shape: f32[16,32], index: 3, kind: input, shape index: {}]   ;;  %s242_s4 = inlined_call_operand.vmem [shape: f32[16,32], index: 4, kind: output, shape index: {}]  }
   0x1   :  { %v28_v0 = vld [vmem:[%s238_s1] sm:$0xff]  ;;  %v29_v1 = vld [vmem:[%s238_s1 + $0x8] sm:$0xff]  ;;  %v30_v2 = vld [vmem:[%s238_s1 + $0x10] sm:$0xff]  ;;  %23 = vst.msk [vmem:[#allocation2 + $0x8] sm:$0xff] %vm21_vm0, %v171_v3 }
   0x2   :  { %22 = vst.msk [vmem:[#allocation2] sm:$0xff] %vm21_vm0, %v171_v3  ;;  %v162_v4 = vpack.c.bf16 %v29_v1, %v28_v0  ;;  %v31_v5 = vld [vmem:[%s238_s1 + $0x18] sm:$0xff]  ;;  %v26_v6 = vld [vmem:[%s239_s0] sm:$0xff]  ;;  %v27_v8 = vld [vmem:[%s239_s0 + $0x8] sm:$0xff] }
   0x3   :  { %v166_v7 = vpack.c.bf16 %v31_v5, %v30_v2  ;;  %159 = vmatprep.mubr.msk.f32.mxu0 %vm21_vm0, %v26_v6  ;;  %v144_v15 = vld [vmem:[%s240_s2] ss:$0 sm:$0xff]  ;;  %v133_v17 = vld [vmem:[%s241_s3 + $0x8] sm:$0xff] }
   0x4   :  { %163 = vmatprep.subr.bf16.mxu0 %v162_v4  ;;  %v132_v20 = vld [vmem:[%s241_s3] sm:$0xff] }
   0x5   :  { %165 = vmatpush3.bf16.msra.mxu0 %v162_v4 }
   0x6   :  { %167 = vmatprep.subr.bf16.mxu0 %v166_v7 }
   0x8   :  { %v25_v9 = vld [vmem:[#allocation2 + $0x8] sm:$0xff] }
   0x9   :  { %169 = vmatpush3.bf16.msra.mxu0 %v166_v7  ;;  %v24_v10 = vld [vmem:[#allocation2] sm:$0xff] }
   0xc   :  { %160 = vmatmul.mubr.msk.f32.vlgmr.msra.gmra.mrb[0].mxu0 %vm21_vm0, %v27_v8 }
  0xdf   :  { %v161_v11 = vpop.f32.mrb[0].mxu0 }
  0xe0   :  { %v115_v12 = vadd.f32 %v161_v11, %v25_v9  ;;  %v105_v13 = vpop.f32.mrb[1].mxu0 }
  0xe1   :  { %v114_v14 = vadd.f32 %v105_v13, %v24_v10 }
  0xe2   :  { %117 = vst.msk [vmem:[#allocation2 + $0x8] sm:$0xff] %vm21_vm0, %v115_v12 }
  0xe3   :  { %116 = vst.msk [vmem:[#allocation2] sm:$0xff] %vm21_vm0, %v114_v14 }
  0xe9   :  { %v122_v16 = vld [vmem:[#allocation2 + $0x8] sm:$0xff] }
  0xea   :  { %v131_v18 = vadd.f32 %v144_v15, %v122_v16  ;;  %v121_v19 = vld [vmem:[#allocation2] sm:$0xff] }
  0xeb   :  { %v130_v21 = vadd.f32 %v144_v15, %v121_v19 }
  0xec   :  { %v135_v22 = vadd.f32 %v133_v17, %v131_v18 }
  0xed   :  { %v134_v23 = vadd.f32 %v132_v20, %v130_v21 }
  0xee   :  { %137 = vst.msk [vmem:[%s242_s4 + $0x8] sm:$0xff] %vm21_vm0, %v135_v22 }
  0xef   :  { %136 = vst.msk [vmem:[%s242_s4] sm:$0xff] %vm21_vm0, %v134_v23 }

// kernel: transformer_encoder_layer.8
= control target key start
LH: loop header
LB: loop body
LE: loop exit
PB: predicated region body
PF: predicated region fallthrough
CT: control target
= control target key end

     0   :  { %vm24_vm0 = vcmask 261120   ;;  %s271_s0 = inlined_call_operand.vmem [shape: f32[16,32], index: 0, kind: input, shape index: {}]   ;;  %s272_s3 = inlined_call_operand.vmem [shape: f32[32,128], index: 3, kind: input, shape index: {}]   ;;  %s273_s1 = inlined_call_operand.vmem [shape: f32[1,32], index: 1, kind: input, shape index: {}]   ;;  %s274_s2 = inlined_call_operand.vmem [shape: f32[1,32], index: 2, kind: input, shape index: {}]   ;;  %s275_s4 = inlined_call_operand.vmem [shape: f32[1,128], index: 4, kind: input, shape index: {}]   ;;  %s276_s5 = inlined_call_operand.vmem [shape: f32[16,128], index: 5, kind: output, shape index: {}]  }
   0x1   :  { %v20_v0 = vld [vmem:[%s271_s0] sm:$0xff]  ;;  %v21_v1 = vld [vmem:[%s271_s0 + $0x8] sm:$0xff]  ;;  %v70_v16 = vld [vmem:[%s272_s3 + $0x10] sm:$0xff] }
   0x2   :  { %v25_v2 = vsel %vm24_vm0, %v20_v0, 0.0  ;;  %v28_v3 = vsel %vm24_vm0, %v21_v1, 0.0  ;;  %v68_v14 = vld [vmem:[%s272_s3] sm:$0xff]  ;;  %v69_v15 = vld [vmem:[%s272_s3 + $0x8] sm:$0xff]  ;;  %v71_v18 = vld [vmem:[%s272_s3 + $0x18] sm:$0xff] }
   0x3   :  { %26 = vadd.xlane.f32.xlu0 %v25_v2  ;;  %v190_v17 = vpack.c.bf16 %v69_v15, %v68_v14  ;;  %v194_v19 = vpack.c.bf16 %v71_v18, %v70_v16  ;;  %v168_v27 = vld [vmem:[%s273_s1] ss:$0 sm:$0xff] }
   0x4   :  { %v169_v29 = vld [vmem:[%s274_s2] ss:$0 sm:$0xff] }
   0x5   :  { %191 = vmatprep.subr.bf16.mxu0 %v190_v17  ;;  %v170_v36 = vld [vmem:[%s275_s4] ss:$0 sm:$0xff] }
   0x6   :  { %193 = vmatpush3.bf16.msra.mxu0 %v190_v17 }
   0x7   :  { %29 = vadd.xlane.f32.xlu0 %v28_v3  ;;  %195 = vmatprep.subr.bf16.mxu0 %v194_v19 }
   0xa   :  { %197 = vmatpush3.bf16.msra.mxu0 %v194_v19 }
  0x90   :  { %v27_v4 = vpop.xlane.xlu0 %26 }
  0x91   :  { %v32_v5 = vmul.f32 0.03125, %v27_v4 }
  0x93   :  { %v34_v6 = vsub.f32 %v20_v0, %v32_v5 }
  0x94   :  { %v30_v7 = vpop.xlane.xlu0 %29 }
  0x95   :  { %v33_v8 = vmul.f32 0.03125, %v30_v7  ;;  %v36_v9 = vmul.f32 %v34_v6, %v34_v6 }
  0x97   :  { %v35_v10 = vsub.f32 %v21_v1, %v33_v8  ;;  %v38_v11 = vsel %vm24_vm0, %v36_v9, 0.0 }
  0x98   :  { %39 = vadd.xlane.f32.xlu1 %v38_v11 }
  0x99   :  { %v37_v12 = vmul.f32 %v35_v10, %v35_v10 }
  0x9b   :  { %v41_v13 = vsel %vm24_vm0, %v37_v12, 0.0 }
  0x9c   :  { %42 = vadd.xlane.f32.xlu1 %v41_v13 }
 0x125   :  { %v40_v20 = vpop.xlane.xlu1 %39 }
 0x126   :  { %v44_v21 = vmul.f32 0.03125, %v40_v20 }
 0x128   :  { %v46_v22 = vadd.f32 1e-05, %v44_v21 }
 0x129   :  { %v43_v23 = vpop.xlane.xlu1 %42 }
 0x12a   :  { %198 = vrsqrt.f32 %v46_v22  ;;  %v45_v24 = vmul.f32 0.03125, %v43_v23 }
 0x12c   :  { %v47_v25 = vadd.f32 1e-05, %v45_v24 }
 0x12e   :  { %200 = vrsqrt.f32 %v47_v25 }
 0x134   :  { %v199_v26 = vpop.eup %198 }
 0x135   :  { %v50_v28 = vmul.f32 %v199_v26, %v34_v6 }
 0x137   :  { %v58_v30 = vmul.f32 %v168_v27, %v50_v28 }
 0x138   :  { %v201_v31 = vpop.eup %200 }
 0x139   :  { %v51_v32 = vmul.f32 %v201_v31, %v35_v10  ;;  %v66_v33 = vadd.f32 %v169_v29, %v58_v30 }
 0x13b   :  { %v59_v34 = vmul.f32 %v168_v27, %v51_v32  ;;  %187 = vmatprep.mubr.msk.f32.mxu0 %vm24_vm0, %v66_v33 }
 0x13d   :  { %v67_v35 = vadd.f32 %v169_v29, %v59_v34 }
 0x13f   :  { %188 = vmatmul.mubr.msk.f32.vlgmr.msra.gmra.mrb[0].mxu0 %vm24_vm0, %v67_v35 }
 0x212   :  { %v189_v37 = vpop.f32.mrb[0].mxu0 }
 0x213   :  { %v157_v38 = vadd.f32 %v189_v37, %v170_v36  ;;  %v151_v39 = vpop.f32.mrb[1].mxu0 }
 0x214   :  { %v152_v40 = vadd.f32 %v170_v36, %v151_v39 }
 0x215   :  { %v161_v41 = vmax.f32 %v157_v38, 0.0 }
 0x216   :  { %v160_v42 = vmax.f32 %v152_v40, 0.0 }
 0x217   :  { %163 = vst [vmem:[%s276_s5 + $0x8] sm:$0xff] %v161_v41 }
 0x218   :  { %162 = vst [vmem:[%s276_s5] sm:$0xff] %v160_v42 }

// kernel: transformer_encoder_layer.6
= control target key start
LH: loop header
LB: loop body
LE: loop exit
PB: predicated region body
PF: predicated region fallthrough
CT: control target
= control target key end

     0   :  { %vm35_vm0 = vcmask 64512   ;;  %v1811_v0 = vmov 0.0   ;;  %vm1812_vm1 = vmmov 0   ;;  %vm18_vm2 = vcmask 7168   ;;  %s2219_s1 = inlined_call_operand.vmem [shape: f32[8,8,8], index: 1, kind: input, shape index: {}]   ;;  %s2220_s0 = inlined_call_operand.vmem [shape: f32[8,8,8], index: 0, kind: input, shape index: {}]   ;;  %s2221_s2 = inlined_call_operand.vmem [shape: f32[8,8,8], index: 2, kind: input, shape index: {}]   ;;  %s2222_s3 = inlined_call_operand.vmem [shape: f32[8,8,8], index: 3, kind: output, shape index: {}]  }
   0x1   :  { %1677 = vmatprep.subr.mxu0 %v1811_v0  ;;  %v60_v1 = vld [vmem:[%s2219_s1] sm:$0xff]  ;;  %36 = vst.msk [vmem:[#allocation4] sm:$0xff] %vm35_vm0, %v1811_v0  ;;  %37 = vst.msk [vmem:[#allocation4 + $0x8] sm:$0xff] %vm35_vm0, %v1811_v0  ;;  %1679 = vmatprep.mubr.msk.f32.mxu0 %vm1812_vm1, %v1811_v0  ;;  %v61_v3 = vld [vmem:[%s2219_s1 + $0x8] sm:$0xff]  ;;  %v1813_v25 = vmov -inf   ;;  %v1814_v50 = vmov 0  }
   0x2   :  { %38 = vst.msk [vmem:[#allocation4 + $0x10] sm:$0xff] %vm35_vm0, %v1811_v0  ;;  %39 = vst.msk [vmem:[#allocation4 + $0x18] sm:$0xff] %vm35_vm0, %v1811_v0  ;;  %v44_v2 = vld [vmem:[%s2220_s0] sm:$0xff]  ;;  %1678 = vmatpush3.xpose.msk.msra.mxu0 %vm35_vm0, %v60_v1  ;;  %1682 = vmatprep.subr.mxu1 %v1811_v0  ;;  %v45_v5 = vld [vmem:[%s2220_s0 + $0x8] sm:$0xff] }
   0x3   :  { %40 = vst.msk [vmem:[#allocation4 + $0x20] sm:$0xff] %vm35_vm0, %v1811_v0  ;;  %41 = vst.msk [vmem:[#allocation4 + $0x28] sm:$0xff] %vm35_vm0, %v1811_v0  ;;  %v52_v4 = vmul.f32 0.35355338, %v44_v2  ;;  %v46_v6 = vld [vmem:[%s2220_s0 + $0x10] sm:$0xff]  ;;  %1683 = vmatpush3.xpose.msk.msra.mxu1 %vm35_vm0, %v61_v3  ;;  %1684 = vmatprep.mubr.msk.f32.mxu1 %vm1812_vm1, %v1811_v0  ;;  %v47_v9 = vld [vmem:[%s2220_s0 + $0x18] sm:$0xff] }
   0x4   :  { %42 = vst.msk [vmem:[#allocation4 + $0x30] sm:$0xff] %vm35_vm0, %v1811_v0  ;;  %43 = vst.msk [vmem:[#allocation4 + $0x38] sm:$0xff] %vm35_vm0, %v1811_v0  ;;  %v53_v7 = vmul.f32 0.35355338, %v45_v5  ;;  %v62_v8 = vld [vmem:[%s2219_s1 + $0x10] sm:$0xff]  ;;  %1687 = vmatprep.subr.mxu0 %v1811_v0  ;;  %1692 = vmatprep.subr.mxu1 %v1811_v0  ;;  %v63_v10 = vld [vmem:[%s2219_s1 + $0x18] sm:$0xff] }
   0x5   :  { %1680 = vmatmul.mubr.msk.f32.vlgmr.msra.gmra.mrb[0].mxu0 %vm35_vm0, %v52_v4  ;;  %v54_v11 = vmul.f32 0.35355338, %v46_v6  ;;  %v55_v12 = vmul.f32 0.35355338, %v47_v9  ;;  %v48_v13 = vld [vmem:[%s2220_s0 + $0x20] sm:$0xff]  ;;  %v49_v15 = vld [vmem:[%s2220_s0 + $0x28] sm:$0xff]  ;;  %1761 = vset.pattern.permute.xlu0 %v1814_v50 }
   0x6   :  { %1685 = vmatmul.mubr.msk.f32.vlgmr.msra.gmra.mrb[0].mxu1 %vm35_vm0, %v53_v7  ;;  %1688 = vmatpush3.xpose.msk.msra.mxu0 %vm35_vm0, %v62_v8  ;;  %v64_v14 = vld [vmem:[%s2219_s1 + $0x20] sm:$0xff]  ;;  %v65_v16 = vld [vmem:[%s2219_s1 + $0x28] sm:$0xff]  ;;  %v56_v17 = vmul.f32 0.35355338, %v48_v13  ;;  %v57_v18 = vmul.f32 0.35355338, %v49_v15 }
   0x7   :  { %1689 = vmatprep.mubr.msk.f32.mxu0 %vm1812_vm1, %v1811_v0  ;;  %1693 = vmatpush3.xpose.msk.msra.mxu1 %vm35_vm0, %v63_v10  ;;  %v50_v19 = vld [vmem:[%s2220_s0 + $0x30] sm:$0xff]  ;;  %v51_v21 = vld [vmem:[%s2220_s0 + $0x38] sm:$0xff]  ;;  %19 = vst.msk [vmem:[#allocation2] sm:$0xff] %vm18_vm2, %v1813_v25  ;;  %20 = vst.msk [vmem:[#allocation2 + $0x8] sm:$0xff] %vm18_vm2, %v1813_v25 }
   0x8   :  { %1694 = vmatprep.mubr.msk.f32.mxu1 %vm1812_vm1, %v1811_v0  ;;  %1697 = vmatprep.subr.mxu0 %v1811_v0  ;;  %v66_v20 = vld [vmem:[%s2219_s1 + $0x30] sm:$0xff]  ;;  %v67_v22 = vld [vmem:[%s2219_s1 + $0x38] sm:$0xff]  ;;  %v58_v23 = vmul.f32 0.35355338, %v50_v19  ;;  %v59_v24 = vmul.f32 0.35355338, %v51_v21 }
   0x9   :  { %1690 = vmatmul.mubr.msk.f32.vlgmr.msra.gmra.mrb[2].mxu0 %vm35_vm0, %v54_v11  ;;  %1702 = vmatprep.subr.mxu1 %v1811_v0  ;;  %21 = vst.msk [vmem:[#allocation2 + $0x10] sm:$0xff] %vm18_vm2, %v1813_v25  ;;  %22 = vst.msk [vmem:[#allocation2 + $0x18] sm:$0xff] %vm18_vm2, %v1813_v25  ;;  %v863_v21 = vld [vmem:[%s2221_s2 + $0x8] sm:$0xff] }
   0xa   :  { %1695 = vmatmul.mubr.msk.f32.vlgmr.msra.gmra.mrb[2].mxu1 %vm35_vm0, %v55_v12  ;;  %1698 = vmatpush3.xpose.msk.msra.mxu0 %vm35_vm0, %v64_v14  ;;  %23 = vst.msk [vmem:[#allocation2 + $0x20] sm:$0xff] %vm18_vm2, %v1813_v25  ;;  %24 = vst.msk [vmem:[#allocation2 + $0x28] sm:$0xff] %vm18_vm2, %v1813_v25 }
   0xb   :  { %1699 = vmatprep.mubr.msk.f32.mxu0 %vm1812_vm1, %v1811_v0  ;;  %1703 = vmatpush3.xpose.msk.msra.mxu1 %vm35_vm0, %v65_v16  ;;  %25 = vst.msk [vmem:[#allocation2 + $0x30] sm:$0xff] %vm18_vm2, %v1813_v25  ;;  %26 = vst.msk [vmem:[#allocation2 + $0x38] sm:$0xff] %vm18_vm2, %v1813_v25 }
   0xc   :  { %1704 = vmatprep.mubr.msk.f32.mxu1 %vm1812_vm1, %v1811_v0  ;;  %1707 = vmatprep.subr.mxu0 %v1811_v0  ;;  %27 = vst.msk [vmem:[#allocation3] sm:$0xff] %vm18_vm2, %v1811_v0  ;;  %28 = vst.msk [vmem:[#allocation3 + $0x8] sm:$0xff] %vm18_vm2, %v1811_v0 }
   0xd   :  { %1700 = vmatmul.mubr.msk.f32.vlgmr.msra.gmra.mrb[4].mxu0 %vm35_vm0, %v56_v17  ;;  %1712 = vmatprep.subr.mxu1 %v1811_v0  ;;  %29 = vst.msk [vmem:[#allocation3 + $0x10] sm:$0xff] %vm18_vm2, %v1811_v0  ;;  %30 = vst.msk [vmem:[#allocation3 + $0x18] sm:$0xff] %vm18_vm2, %v1811_v0 }
   0xe   :  { %1705 = vmatmul.mubr.msk.f32.vlgmr.msra.gmra.mrb[4].mxu1 %vm35_vm0, %v57_v18  ;;  %1708 = vmatpush3.xpose.msk.msra.mxu0 %vm35_vm0, %v66_v20  ;;  %31 = vst.msk [vmem:[#allocation3 + $0x20] sm:$0xff] %vm18_vm2, %v1811_v0  ;;  %32 = vst.msk [vmem:[#allocation3 + $0x28] sm:$0xff] %vm18_vm2, %v1811_v0  ;;  %v2001_v51 = vld [vmem:[#allocation2] sm:$0xff]  ;;  %v2006_v54 = vld [vmem:[#allocation2 + $0x8] sm:$0xff] }
   0xf   :  { %1709 = vmatprep.mubr.msk.f32.mxu0 %vm1812_vm1, %v1811_v0  ;;  %1713 = vmatpush3.xpose.msk.msra.mxu1 %vm35_vm0, %v67_v22  ;;  %33 = vst.msk [vmem:[#allocation3 + $0x30] sm:$0xff] %vm18_vm2, %v1811_v0  ;;  %34 = vst.msk [vmem:[#allocation3 + $0x38] sm:$0xff] %vm18_vm2, %v1811_v0  ;;  %v862_v18 = vld [vmem:[%s2221_s2] sm:$0xff] }
  0x10   :  { %1714 = vmatprep.mubr.msk.f32.mxu1 %vm1812_vm1, %v1811_v0  ;;  %1717 = vmatprep.subr.mxu0 %v1811_v0  ;;  %v2008_v55 = vld [vmem:[#allocation2 + $0x10] sm:$0xff]  ;;  %v2021_v61 = vld [vmem:[#allocation2 + $0x18] sm:$0xff] }
  0x11   :  { %1710 = vmatmul.mubr.msk.f32.vlgmr.msra.gmra.mrb[6].mxu0 %vm35_vm0, %v58_v23  ;;  %1722 = vmatprep.subr.mxu1 %v1811_v0  ;;  %v2023_v62 = vld [vmem:[#allocation2 + $0x20] sm:$0xff]  ;;  %v2040_v6 = vld [vmem:[#allocation2 + $0x28] sm:$0xff] }
  0x12   :  { %1715 = vmatmul.mubr.msk.f32.vlgmr.msra.gmra.mrb[6].mxu1 %vm35_vm0, %v59_v24  ;;  %1719 = vmatprep.mubr.msk.f32.mxu0 %vm1812_vm1, %v1811_v0  ;;  %v2042_v7 = vld [vmem:[#allocation2 + $0x30] sm:$0xff]  ;;  %v2059_v14 = vld [vmem:[#allocation2 + $0x38] sm:$0xff] }
  0x13   :  { %1724 = vmatprep.mubr.msk.f32.mxu1 %vm1812_vm1, %v1811_v0  ;;  %1762 = vset.pattern.permute.xlu1 %v1814_v50 }
  0x14   :  { %1718 = vmatpush3.msra.mxu0 %v862_v18  ;;  %1723 = vmatpush3.msra.mxu1 %v863_v21 }
  0x15   :  { %1727 = vmatprep.subr.mxu0 %v1811_v0  ;;  %1732 = vmatprep.subr.mxu1 %v1811_v0 }
  0xd8   :  { %v1969_v26 = vpop.f32.mrb[0].mxu0 }
  0xd9   :  { %v1681_v27 = vpop.f32.mrb[1].mxu0  ;;  %v685_v28 = vsel %vm35_vm0, %v1969_v26, -inf  ;;  %v1973_v29 = vpop.f32.mrb[0].mxu1 }
  0xda   :  { %686 = vmax.xlane.f32.xlu0 %v685_v28  ;;  %v1686_v30 = vpop.f32.mrb[1].mxu1  ;;  %v688_v31 = vsel %vm35_vm0, %v1973_v29, -inf }
  0xdc   :  { %v1977_v32 = vpop.f32.mrb[2].mxu0 }
  0xdd   :  { %v1691_v33 = vpop.f32.mrb[3].mxu0  ;;  %v691_v34 = vsel %vm35_vm0, %v1977_v32, -inf  ;;  %v1981_v35 = vpop.f32.mrb[2].mxu1 }
  0xde   :  { %689 = vmax.xlane.f32.xlu0 %v688_v31  ;;  %692 = vmax.xlane.f32.xlu1 %v691_v34  ;;  %v1696_v36 = vpop.f32.mrb[3].mxu1  ;;  %v694_v37 = vsel %vm35_vm0, %v1981_v35, -inf }
  0xe0   :  { %v1985_v38 = vpop.f32.mrb[4].mxu0 }
  0xe1   :  { %v1701_v39 = vpop.f32.mrb[5].mxu0  ;;  %v697_v40 = vsel %vm35_vm0, %v1985_v38, -inf  ;;  %v1989_v41 = vpop.f32.mrb[4].mxu1 }
  0xe2   :  { %695 = vmax.xlane.f32.xlu1 %v694_v37  ;;  %698 = vmax.xlane.f32.xlu0 %v697_v40  ;;  %v1706_v42 = vpop.f32.mrb[5].mxu1  ;;  %v700_v43 = vsel %vm35_vm0, %v1989_v41, -inf  ;;  %v864_v37 = vld [vmem:[%s2221_s2 + $0x10] sm:$0xff] }
  0xe4   :  { %v1993_v44 = vpop.f32.mrb[6].mxu0 }
  0xe5   :  { %v1711_v45 = vpop.f32.mrb[7].mxu0  ;;  %v703_v46 = vsel %vm35_vm0, %v1993_v44, -inf  ;;  %v1997_v47 = vpop.f32.mrb[6].mxu1 }
  0xe6   :  { %701 = vmax.xlane.f32.xlu1 %v700_v43  ;;  %704 = vmax.xlane.f32.xlu0 %v703_v46  ;;  %v1716_v48 = vpop.f32.mrb[7].mxu1  ;;  %v706_v49 = vsel %vm35_vm0, %v1997_v47, -inf }
  0xe7   :  { %v866_v48 = vld [vmem:[%s2221_s2 + $0x20] sm:$0xff] }
  0xea   :  { %707 = vmax.xlane.f32.xlu1 %v706_v49 }
 0x167   :  { %v687_v52 = vpop.xlane.xlu0 %686 }
 0x168   :  { %v2004_v53 = vmax.f32 %v2001_v51, %v687_v52 }
 0x16a   :  { %v717_v56 = vsub.f32 %v2001_v51, %v2004_v53  ;;  %1526 = vst.msk [vmem:[#allocation2] sm:$0xff] %vm18_vm2, %v2004_v53  ;;  %743 = vperm.xlu0 %1761, %v2004_v53  }
 0x16b   :  { %v690_v57 = vpop.xlane.xlu0 %689  ;;  %v693_v58 = vpop.xlane.xlu1 %692 }
 0x16c   :  { %v2016_v59 = vmax.f32 %v2006_v54, %v690_v57  ;;  %v2019_v60 = vmax.f32 %v2008_v55, %v693_v58  ;;  %v867_v58 = vld [vmem:[%s2221_s2 + $0x28] sm:$0xff] }
 0x16e   :  { %v718_v63 = vsub.f32 %v2006_v54, %v2016_v59  ;;  %1527 = vst.msk [vmem:[#allocation2 + $0x8] sm:$0xff] %vm18_vm2, %v2016_v59  ;;  %748 = vperm.xlu1 %1762, %v2016_v59   ;;  %v719_v1 = vsub.f32 %v2008_v55, %v2019_v60  ;;  %1528 = vst.msk [vmem:[#allocation2 + $0x10] sm:$0xff] %vm18_vm2, %v2019_v60 }
 0x16f   :  { %v696_v2 = vpop.xlane.xlu1 %695  ;;  %v699_v3 = vpop.xlane.xlu0 %698 }
 0x170   :  { %v2035_v4 = vmax.f32 %v2021_v61, %v696_v2  ;;  %v2038_v5 = vmax.f32 %v2023_v62, %v699_v3 }
 0x172   :  { %753 = vperm.xlu1 %1762, %v2019_v60   ;;  %v720_v8 = vsub.f32 %v2021_v61, %v2035_v4  ;;  %1529 = vst.msk [vmem:[#allocation2 + $0x18] sm:$0xff] %vm18_vm2, %v2035_v4  ;;  %v721_v9 = vsub.f32 %v2023_v62, %v2038_v5  ;;  %1530 = vst.msk [vmem:[#allocation2 + $0x20] sm:$0xff] %vm18_vm2, %v2038_v5 }
 0x173   :  { %v702_v10 = vpop.xlane.xlu1 %701  ;;  %v705_v11 = vpop.xlane.xlu0 %704 }
 0x174   :  { %v2054_v12 = vmax.f32 %v2040_v6, %v702_v10  ;;  %v2057_v13 = vmax.f32 %v2042_v7, %v705_v11  ;;  %v733_v54 = vmul.f32 1.442695, %v721_v9 }
 0x176   :  { %758 = vperm.xlu1 %1762, %v2035_v4   ;;  %v722_v15 = vsub.f32 %v2040_v6, %v2054_v12  ;;  %1531 = vst.msk [vmem:[#allocation2 + $0x28] sm:$0xff] %vm18_vm2, %v2054_v12  ;;  %v723_v16 = vsub.f32 %v2042_v7, %v2057_v13  ;;  %1532 = vst.msk [vmem:[#allocation2 + $0x30] sm:$0xff] %vm18_vm2, %v2057_v13 }
 0x177   :  { %v708_v17 = vpop.xlane.xlu1 %707 }
 0x178   :  { %v2074_v19 = vmax.f32 %v2059_v14, %v708_v17  ;;  %v868_v17 = vld [vmem:[%s2221_s2 + $0x30] sm:$0xff]  ;;  %v735_v51 = vmul.f32 1.442695, %v722_v15  ;;  %v737_v53 = vmul.f32 1.442695, %v723_v16 }
 0x17a   :  { %763 = vperm.xlu1 %1762, %v2038_v5   ;;  %v724_v20 = vsub.f32 %v2059_v14, %v2074_v19  ;;  %1533 = vst.msk [vmem:[#allocation2 + $0x38] sm:$0xff] %vm18_vm2, %v2074_v19  ;;  %v805_v5 = vld [vmem:[#allocation3] sm:$0xff]  ;;  %v807_v14 = vld [vmem:[#allocation3 + $0x10] sm:$0xff] }
 0x17c   :  { %v739_v55 = vmul.f32 1.442695, %v724_v20  ;;  %v808_v20 = vld [vmem:[#allocation3 + $0x18] sm:$0xff] }
 0x17e   :  { %768 = vperm.xlu1 %1762, %v2054_v12  }
 0x182   :  { %773 = vperm.xlu1 %1762, %v2057_v13  }
 0x186   :  { %778 = vperm.xlu1 %1762, %v2074_v19  }
 0x1e9   :  { %v744_v22 = vpop.permute.xlu0 %743 }
 0x1ea   :  { %v781_v23 = vsub.f32 %v1969_v26, %v744_v22 }
 0x1ec   :  { %v789_v24 = vmul.f32 1.442695, %v781_v23 }
 0x1ed   :  { %v749_v25 = vpop.permute.xlu1 %748 }
 0x1ee   :  { %1763 = vpow2.f32 %v789_v24  ;;  %v782_v27 = vsub.f32 %v1973_v29, %v749_v25 }
 0x1f0   :  { %v791_v28 = vmul.f32 1.442695, %v782_v27 }
 0x1f1   :  { %v754_v30 = vpop.permute.xlu1 %753 }
 0x1f2   :  { %1765 = vpow2.f32 %v791_v28  ;;  %v783_v31 = vsub.f32 %v1977_v32, %v754_v30  ;;  %v865_v32 = vld [vmem:[%s2221_s2 + $0x18] sm:$0xff] }
 0x1f4   :  { %v793_v33 = vmul.f32 1.442695, %v783_v31  ;;  %v727_v31 = vmul.f32 1.442695, %v718_v63 }
 0x1f5   :  { %v759_v34 = vpop.permute.xlu1 %758 }
 0x1f6   :  { %1767 = vpow2.f32 %v793_v33  ;;  %v784_v36 = vsub.f32 %v1981_v35, %v759_v34  ;;  %v729_v33 = vmul.f32 1.442695, %v719_v1  ;;  %v731_v34 = vmul.f32 1.442695, %v720_v8  ;;  %v806_v8 = vld [vmem:[#allocation3 + $0x8] sm:$0xff] }
 0x1f8   :  { %v1764_v26 = vpop.eup %1763  ;;  %v795_v39 = vmul.f32 1.442695, %v784_v36 }
 0x1f9   :  { %v764_v40 = vpop.permute.xlu1 %763  ;;  %1720 = vmatmul.mubr.msk.f32.vlgmr.msra.gmra.mrb[8].mxu0 %vm35_vm0, %v1764_v26  ;;  %v821_v29 = vsel %vm35_vm0, %v1764_v26, 0.0 }
 0x1fa   :  { %1769 = vpow2.f32 %v795_v39  ;;  %v785_v42 = vsub.f32 %v1985_v38, %v764_v40  ;;  %822 = vadd.xlane.f32.xlu1 %v821_v29  ;;  %1728 = vmatpush3.msra.mxu0 %v864_v37  ;;  %v809_v40 = vld [vmem:[#allocation3 + $0x20] sm:$0xff] }
 0x1fb   :  { %1729 = vmatprep.mubr.msk.f32.mxu0 %vm1812_vm1, %v1811_v0  ;;  %1737 = vmatprep.subr.mxu0 %v1811_v0 }
 0x1fc   :  { %v1766_v35 = vpop.eup %1765  ;;  %v797_v43 = vmul.f32 1.442695, %v785_v42 }
 0x1fd   :  { %1725 = vmatmul.mubr.msk.f32.vlgmr.msra.gmra.mrb[8].mxu1 %vm35_vm0, %v1766_v35  ;;  %v769_v45 = vpop.permute.xlu1 %768  ;;  %v824_v46 = vsel %vm35_vm0, %v1766_v35, 0.0 }
 0x1fe   :  { %1771 = vpow2.f32 %v797_v43  ;;  %v786_v38 = vsub.f32 %v1989_v41, %v769_v45  ;;  %825 = vadd.xlane.f32.xlu0 %v824_v46  ;;  %1733 = vmatpush3.msra.mxu1 %v865_v32  ;;  %v810_v43 = vld [vmem:[#allocation3 + $0x28] sm:$0xff] }
 0x1ff   :  { %1734 = vmatprep.mubr.msk.f32.mxu1 %vm1812_vm1, %v1811_v0  ;;  %1742 = vmatprep.subr.mxu1 %v1811_v0 }
 0x200   :  { %v1768_v49 = vpop.eup %1767  ;;  %v799_v50 = vmul.f32 1.442695, %v786_v38 }
 0x201   :  { %v774_v52 = vpop.permute.xlu1 %773  ;;  %1730 = vmatmul.mubr.msk.f32.vlgmr.msra.gmra.mrb[10].mxu0 %vm35_vm0, %v1768_v49  ;;  %v827_v57 = vsel %vm35_vm0, %v1768_v49, 0.0  ;;  %v811_v49 = vld [vmem:[#allocation3 + $0x30] sm:$0xff] }
 0x202   :  { %1773 = vpow2.f32 %v799_v50  ;;  %v787_v41 = vsub.f32 %v1993_v44, %v774_v52  ;;  %828 = vadd.xlane.f32.xlu0 %v827_v57  ;;  %1738 = vmatpush3.msra.mxu0 %v866_v48 }
 0x203   :  { %1739 = vmatprep.mubr.msk.f32.mxu0 %vm1812_vm1, %v1811_v0  ;;  %1747 = vmatprep.subr.mxu0 %v1811_v0 }
 0x204   :  { %v1770_v2 = vpop.eup %1769  ;;  %v801_v3 = vmul.f32 1.442695, %v787_v41 }
 0x205   :  { %1735 = vmatmul.mubr.msk.f32.vlgmr.msra.gmra.mrb[10].mxu1 %vm35_vm0, %v1770_v2  ;;  %v779_v10 = vpop.permute.xlu1 %778  ;;  %v830_v11 = vsel %vm35_vm0, %v1770_v2, 0.0  ;;  %v812_v2 = vld [vmem:[#allocation3 + $0x38] sm:$0xff] }
 0x206   :  { %1775 = vpow2.f32 %v801_v3  ;;  %v788_v44 = vsub.f32 %v1997_v47, %v779_v10  ;;  %831 = vadd.xlane.f32.xlu1 %v830_v11  ;;  %1743 = vmatpush3.msra.mxu1 %v867_v58  ;;  %v869_v47 = vld [vmem:[%s2221_s2 + $0x38] sm:$0xff] }
 0x207   :  { %1744 = vmatprep.mubr.msk.f32.mxu1 %vm1812_vm1, %v1811_v0  ;;  %1752 = vmatprep.subr.mxu1 %v1811_v0 }
 0x208   :  { %v1772_v18 = vpop.eup %1771  ;;  %v803_v21 = vmul.f32 1.442695, %v788_v44 }
 0x209   :  { %1740 = vmatmul.mubr.msk.f32.vlgmr.msra.gmra.mrb[12].mxu0 %vm35_vm0, %v1772_v18  ;;  %v833_v22 = vsel %vm35_vm0, %v1772_v18, 0.0 }
 0x20a   :  { %1777 = vpow2.f32 %v803_v21  ;;  %834 = vadd.xlane.f32.xlu0 %v833_v22  ;;  %1748 = vmatpush3.msra.mxu0 %v868_v17 }
 0x20b   :  { %1749 = vmatprep.mubr.msk.f32.mxu0 %vm1812_vm1, %v1811_v0  ;;  %1779 = vpow2.f32 %v727_v31  ;;  %v1454_v31 = vld [vmem:[#allocation4] sm:$0xff] }
 0x20c   :  { %v1774_v23 = vpop.eup %1773 }
 0x20d   :  { %1745 = vmatmul.mubr.msk.f32.vlgmr.msra.gmra.mrb[12].mxu1 %vm35_vm0, %v1774_v23  ;;  %v836_v24 = vsel %vm35_vm0, %v1774_v23, 0.0 }
 0x20e   :  { %837 = vadd.xlane.f32.xlu1 %v836_v24  ;;  %1753 = vmatpush3.msra.mxu1 %v869_v47 }
 0x20f   :  { %1754 = vmatprep.mubr.msk.f32.mxu1 %vm1812_vm1, %v1811_v0  ;;  %v725_v0 = vmul.f32 1.442695, %v717_v56 }
 0x210   :  { %v1776_v25 = vpop.eup %1775 }
 0x211   :  { %1750 = vmatmul.mubr.msk.f32.vlgmr.msra.gmra.mrb[14].mxu0 %vm35_vm0, %v1776_v25  ;;  %v839_v27 = vsel %vm35_vm0, %v1776_v25, 0.0  ;;  %1781 = vpow2.f32 %v725_v0 }
 0x212   :  { %840 = vadd.xlane.f32.xlu0 %v839_v27  ;;  %1783 = vpow2.f32 %v729_v33 }
 0x213   :  { %1785 = vpow2.f32 %v731_v34 }
 0x214   :  { %v1778_v28 = vpop.eup %1777  ;;  %1787 = vpow2.f32 %v733_v54  ;;  %v1455_v54 = vld [vmem:[#allocation4 + $0x8] sm:$0xff] }
 0x215   :  { %1755 = vmatmul.mubr.msk.f32.vlgmr.msra.gmra.mrb[14].mxu1 %vm35_vm0, %v1778_v28  ;;  %v842_v30 = vsel %vm35_vm0, %v1778_v28, 0.0  ;;  %1789 = vpow2.f32 %v735_v51  ;;  %v1780_v56 = vpop.eup %1779 }
 0x216   :  { %843 = vadd.xlane.f32.xlu1 %v842_v30  ;;  %1791 = vpow2.f32 %v737_v53  ;;  %v814_v12 = vmul.f32 %v1780_v56, %v806_v8 }
 0x217   :  { %1793 = vpow2.f32 %v739_v55 }
 0x21b   :  { %v1782_v59 = vpop.eup %1781 }
 0x21c   :  { %v1784_v60 = vpop.eup %1783  ;;  %v813_v6 = vmul.f32 %v1782_v59, %v805_v5 }
 0x21d   :  { %v1786_v61 = vpop.eup %1785  ;;  %v815_v16 = vmul.f32 %v1784_v60, %v807_v14 }
 0x21e   :  { %v1788_v62 = vpop.eup %1787  ;;  %v816_v26 = vmul.f32 %v1786_v61, %v808_v20  ;;  %v1459_v20 = vld [vmem:[#allocation4 + $0x28] sm:$0xff] }
 0x21f   :  { %v1790_v63 = vpop.eup %1789  ;;  %v817_v32 = vmul.f32 %v1788_v62, %v809_v40 }
 0x220   :  { %v1792_v1 = vpop.eup %1791  ;;  %v818_v38 = vmul.f32 %v1790_v63, %v810_v43 }
 0x221   :  { %v1794_v4 = vpop.eup %1793  ;;  %v819_v41 = vmul.f32 %v1792_v1, %v811_v49 }
 0x222   :  { %v820_v44 = vmul.f32 %v1794_v4, %v812_v2 }
 0x227   :  { %1469 = vperm.xlu1 %1762, %v1780_v56  }
 0x228   :  { %1464 = vperm.xlu0 %1761, %v1782_v59   ;;  %v1456_v59 = vld [vmem:[#allocation4 + $0x10] sm:$0xff] }
 0x22b   :  { %1474 = vperm.xlu1 %1762, %v1784_v60  }
 0x22c   :  { %1479 = vperm.xlu0 %1761, %v1786_v61  }
 0x22f   :  { %1484 = vperm.xlu1 %1762, %v1788_v62  }
 0x230   :  { %1489 = vperm.xlu0 %1761, %v1790_v63  }
 0x233   :  { %1494 = vperm.xlu1 %1762, %v1792_v1  }
 0x234   :  { %1499 = vperm.xlu0 %1761, %v1794_v4   ;;  %v1457_v4 = vld [vmem:[#allocation4 + $0x18] sm:$0xff] }
 0x287   :  { %v823_v7 = vpop.xlane.xlu1 %822 }
 0x288   :  { %v845_v9 = vadd.f32 %v823_v7, %v813_v6 }
 0x28a   :  { %854 = vst.msk [vmem:[#allocation3] sm:$0xff] %vm18_vm2, %v845_v9 }
 0x28b   :  { %v826_v13 = vpop.xlane.xlu0 %825 }
 0x28c   :  { %v846_v15 = vadd.f32 %v826_v13, %v814_v12  ;;  %v1458_v12 = vld [vmem:[#allocation4 + $0x20] sm:$0xff] }
 0x28e   :  { %855 = vst.msk [vmem:[#allocation3 + $0x8] sm:$0xff] %vm18_vm2, %v846_v15 }
 0x28f   :  { %v829_v19 = vpop.xlane.xlu0 %828 }
 0x290   :  { %v847_v36 = vadd.f32 %v829_v19, %v815_v16 }
 0x291   :  { %v1545_v37 = vld [vmem:[#allocation3] sm:$0xff] }
 0x292   :  { %856 = vst.msk [vmem:[#allocation3 + $0x10] sm:$0xff] %vm18_vm2, %v847_v36  ;;  %1795 = vrcp.f32 %v1545_v37 }
 0x293   :  { %v832_v39 = vpop.xlane.xlu1 %831 }
 0x294   :  { %v848_v29 = vadd.f32 %v832_v39, %v816_v26 }
 0x295   :  { %v1546_v42 = vld [vmem:[#allocation3 + $0x8] sm:$0xff] }
 0x296   :  { %857 = vst.msk [vmem:[#allocation3 + $0x18] sm:$0xff] %vm18_vm2, %v848_v29  ;;  %1797 = vrcp.f32 %v1546_v42  ;;  %v1460_v29 = vld [vmem:[#allocation4 + $0x30] sm:$0xff] }
 0x297   :  { %v835_v35 = vpop.xlane.xlu0 %834 }
 0x298   :  { %v849_v45 = vadd.f32 %v835_v35, %v817_v32 }
 0x299   :  { %v1547_v46 = vld [vmem:[#allocation3 + $0x10] sm:$0xff] }
 0x29a   :  { %858 = vst.msk [vmem:[#allocation3 + $0x20] sm:$0xff] %vm18_vm2, %v849_v45  ;;  %1799 = vrcp.f32 %v1547_v46  ;;  %v1461_v46 = vld [vmem:[#allocation4 + $0x38] sm:$0xff] }
 0x29b   :  { %v838_v48 = vpop.xlane.xlu1 %837 }
 0x29c   :  { %v1796_v50 = vpop.eup %1795  ;;  %v850_v52 = vadd.f32 %v838_v48, %v818_v38 }
 0x29d   :  { %1563 = vperm.xlu1 %1762, %v1796_v50   ;;  %v1548_v57 = vld [vmem:[#allocation3 + $0x18] sm:$0xff] }
 0x29e   :  { %859 = vst.msk [vmem:[#allocation3 + $0x28] sm:$0xff] %vm18_vm2, %v850_v52  ;;  %1801 = vrcp.f32 %v1548_v57 }
 0x29f   :  { %v841_v58 = vpop.xlane.xlu0 %840 }
 0x2a0   :  { %v1798_v3 = vpop.eup %1797  ;;  %v851_v10 = vadd.f32 %v841_v58, %v819_v41 }
 0x2a1   :  { %1568 = vperm.xlu0 %1761, %v1798_v3   ;;  %v1549_v11 = vld [vmem:[#allocation3 + $0x20] sm:$0xff] }
 0x2a2   :  { %860 = vst.msk [vmem:[#allocation3 + $0x30] sm:$0xff] %vm18_vm2, %v851_v10  ;;  %1803 = vrcp.f32 %v1549_v11 }
 0x2a3   :  { %v844_v17 = vpop.xlane.xlu1 %843 }
 0x2a4   :  { %v1800_v18 = vpop.eup %1799  ;;  %v852_v21 = vadd.f32 %v844_v17, %v820_v44 }
 0x2a5   :  { %1573 = vperm.xlu1 %1762, %v1800_v18   ;;  %v1550_v22 = vld [vmem:[#allocation3 + $0x28] sm:$0xff] }
 0x2a6   :  { %861 = vst.msk [vmem:[#allocation3 + $0x38] sm:$0xff] %vm18_vm2, %v852_v21  ;;  %1805 = vrcp.f32 %v1550_v22 }
 0x2a7   :  { %v1465_v0 = vpop.permute.xlu0 %1464  ;;  %v1470_v33 = vpop.permute.xlu1 %1469 }
 0x2a8   :  { %v1802_v47 = vpop.eup %1801  ;;  %v1502_v34 = vmul.f32 %v1465_v0, %v1454_v31  ;;  %v1503_v56 = vmul.f32 %v1470_v33, %v1455_v54 }
 0x2a9   :  { %1578 = vperm.xlu0 %1761, %v1802_v47   ;;  %v1551_v23 = vld [vmem:[#allocation3 + $0x30] sm:$0xff] }
 0x2aa   :  { %1807 = vrcp.f32 %v1551_v23 }
 0x2ab   :  { %v1475_v60 = vpop.permute.xlu1 %1474  ;;  %v1480_v5 = vpop.permute.xlu0 %1479 }
 0x2ac   :  { %v1804_v24 = vpop.eup %1803  ;;  %v1504_v1 = vmul.f32 %v1475_v60, %v1456_v59  ;;  %v1505_v9 = vmul.f32 %v1480_v5, %v1457_v4 }
 0x2ad   :  { %1583 = vperm.xlu1 %1762, %v1804_v24   ;;  %v1552_v25 = vld [vmem:[#allocation3 + $0x38] sm:$0xff] }
 0x2ae   :  { %1809 = vrcp.f32 %v1552_v25 }
 0x2af   :  { %v1485_v13 = vpop.permute.xlu1 %1484  ;;  %v1490_v36 = vpop.permute.xlu0 %1489 }
 0x2b0   :  { %v1806_v27 = vpop.eup %1805  ;;  %v1506_v19 = vmul.f32 %v1485_v13, %v1458_v12  ;;  %v1507_v40 = vmul.f32 %v1490_v36, %v1459_v20 }
 0x2b1   :  { %1588 = vperm.xlu0 %1761, %v1806_v27  }
 0x2b3   :  { %v1495_v42 = vpop.permute.xlu1 %1494  ;;  %v1500_v38 = vpop.permute.xlu0 %1499 }
 0x2b4   :  { %v1808_v28 = vpop.eup %1807  ;;  %v1508_v45 = vmul.f32 %v1495_v42, %v1460_v29  ;;  %v1509_v52 = vmul.f32 %v1500_v38, %v1461_v46 }
 0x2b5   :  { %1593 = vperm.xlu1 %1762, %v1808_v28  }
 0x2b8   :  { %v1810_v30 = vpop.eup %1809 }
 0x2b9   :  { %1598 = vperm.xlu0 %1761, %v1810_v30  }
 0x2cc   :  { %v939_v51 = vpop.f32.mrb[8].mxu0 }
 0x2cd   :  { %v1510_v53 = vadd.f32 %v1502_v34, %v939_v51  ;;  %v1721_v55 = vpop.f32.mrb[9].mxu0 }
 0x2cf   :  { %1518 = vst.msk [vmem:[#allocation4] sm:$0xff] %vm35_vm0, %v1510_v53 }
 0x2d0   :  { %v1012_v61 = vpop.f32.mrb[8].mxu1 }
 0x2d1   :  { %v1511_v62 = vadd.f32 %v1503_v56, %v1012_v61  ;;  %v1726_v63 = vpop.f32.mrb[9].mxu1 }
 0x2d3   :  { %1519 = vst.msk [vmem:[#allocation4 + $0x8] sm:$0xff] %vm35_vm0, %v1511_v62 }
 0x2d4   :  { %v1085_v6 = vpop.f32.mrb[10].mxu0 }
 0x2d5   :  { %v1512_v7 = vadd.f32 %v1504_v1, %v1085_v6  ;;  %v1731_v8 = vpop.f32.mrb[11].mxu0 }
 0x2d6   :  { %v1537_v3 = vld [vmem:[#allocation4] sm:$0xff] }
 0x2d7   :  { %1520 = vst.msk [vmem:[#allocation4 + $0x10] sm:$0xff] %vm35_vm0, %v1512_v7 }
 0x2d8   :  { %v1158_v14 = vpop.f32.mrb[10].mxu1 }
 0x2d9   :  { %v1513_v15 = vadd.f32 %v1505_v9, %v1158_v14  ;;  %v1736_v16 = vpop.f32.mrb[11].mxu1 }
 0x2da   :  { %v1538_v11 = vld [vmem:[#allocation4 + $0x8] sm:$0xff] }
 0x2db   :  { %1521 = vst.msk [vmem:[#allocation4 + $0x18] sm:$0xff] %vm35_vm0, %v1513_v15 }
 0x2dc   :  { %v1231_v37 = vpop.f32.mrb[12].mxu0 }
 0x2dd   :  { %v1514_v26 = vadd.f32 %v1506_v19, %v1231_v37  ;;  %v1741_v39 = vpop.f32.mrb[13].mxu0 }
 0x2de   :  { %v1539_v21 = vld [vmem:[#allocation4 + $0x10] sm:$0xff] }
 0x2df   :  { %1522 = vst.msk [vmem:[#allocation4 + $0x20] sm:$0xff] %vm35_vm0, %v1514_v26 }
 0x2e0   :  { %v1304_v32 = vpop.f32.mrb[12].mxu1 }
 0x2e1   :  { %v1515_v35 = vadd.f32 %v1507_v40, %v1304_v32  ;;  %v1746_v43 = vpop.f32.mrb[13].mxu1 }
 0x2e2   :  { %v1540_v47 = vld [vmem:[#allocation4 + $0x18] sm:$0xff] }
 0x2e3   :  { %1523 = vst.msk [vmem:[#allocation4 + $0x28] sm:$0xff] %vm35_vm0, %v1515_v35 }
 0x2e4   :  { %v1377_v48 = vpop.f32.mrb[14].mxu0 }
 0x2e5   :  { %v1516_v49 = vadd.f32 %v1508_v45, %v1377_v48  ;;  %v1751_v50 = vpop.f32.mrb[15].mxu0 }
 0x2e6   :  { %v1541_v27 = vld [vmem:[#allocation4 + $0x20] sm:$0xff] }
 0x2e7   :  { %1524 = vst.msk [vmem:[#allocation4 + $0x30] sm:$0xff] %vm35_vm0, %v1516_v49 }
 0x2e8   :  { %v1450_v57 = vpop.f32.mrb[14].mxu1 }
 0x2e9   :  { %v1517_v41 = vadd.f32 %v1509_v52, %v1450_v57  ;;  %v1756_v58 = vpop.f32.mrb[15].mxu1 }
 0x2ea   :  { %v1542_v30 = vld [vmem:[#allocation4 + $0x28] sm:$0xff] }
 0x2eb   :  { %1525 = vst.msk [vmem:[#allocation4 + $0x38] sm:$0xff] %vm35_vm0, %v1517_v41 }
 0x2ee   :  { %v1543_v34 = vld [vmem:[#allocation4 + $0x30] sm:$0xff] }
 0x2f2   :  { %v1544_v51 = vld [vmem:[#allocation4 + $0x38] sm:$0xff] }
 0x31c   :  { %v1564_v2 = vpop.permute.xlu1 %1563 }
 0x31d   :  { %v1601_v10 = vmul.f32 %v1564_v2, %v1537_v3 }
 0x31f   :  { %1609 = vst.msk [vmem:[%s2222_s3] sm:$0xff] %vm35_vm0, %v1601_v10 }
 0x320   :  { %v1569_v44 = vpop.permute.xlu0 %1568 }
 0x321   :  { %v1602_v17 = vmul.f32 %v1569_v44, %v1538_v11 }
 0x323   :  { %1610 = vst.msk [vmem:[%s2222_s3 + $0x8] sm:$0xff] %vm35_vm0, %v1602_v17 }
 0x324   :  { %v1574_v18 = vpop.permute.xlu1 %1573 }
 0x325   :  { %v1603_v22 = vmul.f32 %v1574_v18, %v1539_v21 }
 0x327   :  { %1611 = vst.msk [vmem:[%s2222_s3 + $0x10] sm:$0xff] %vm35_vm0, %v1603_v22 }
 0x328   :  { %v1579_v23 = vpop.permute.xlu0 %1578 }
 0x329   :  { %v1604_v24 = vmul.f32 %v1579_v23, %v1540_v47 }
 0x32b   :  { %1612 = vst.msk [vmem:[%s2222_s3 + $0x18] sm:$0xff] %vm35_vm0, %v1604_v24 }
 0x32c   :  { %v1584_v25 = vpop.permute.xlu1 %1583 }
 0x32d   :  { %v1605_v28 = vmul.f32 %v1584_v25, %v1541_v27 }
 0x32f   :  { %1613 = vst.msk [vmem:[%s2222_s3 + $0x20] sm:$0xff] %vm35_vm0, %v1605_v28 }
 0x330   :  { %v1589_v31 = vpop.permute.xlu0 %1588 }
 0x331   :  { %v1606_v0 = vmul.f32 %v1589_v31, %v1542_v30 }
 0x333   :  { %1614 = vst.msk [vmem:[%s2222_s3 + $0x28] sm:$0xff] %vm35_vm0, %v1606_v0 }
 0x334   :  { %v1594_v33 = vpop.permute.xlu1 %1593 }
 0x335   :  { %v1607_v54 = vmul.f32 %v1594_v33, %v1543_v34 }
 0x337   :  { %1615 = vst.msk [vmem:[%s2222_s3 + $0x30] sm:$0xff] %vm35_vm0, %v1607_v54 }
 0x338   :  { %v1599_v53 = vpop.permute.xlu0 %1598 }
 0x339   :  { %v1608_v55 = vmul.f32 %v1599_v53, %v1544_v51 }
 0x33b   :  { %1616 = vst.msk [vmem:[%s2222_s3 + $0x38] sm:$0xff] %vm35_vm0, %v1608_v55 }

// kernel: transformer_encoder_layer.9
= control target key start
LH: loop header
LB: loop body
LE: loop exit
PB: predicated region body
PF: predicated region fallthrough
CT: control target
= control target key end

     0   :  { %vm22_vm0 = vcmask 261120   ;;  %v275_v5 = vmov 0.0   ;;  %s385_s0 = inlined_call_operand.vmem [shape: f32[16,128], index: 0, kind: input, shape index: {}]   ;;  %s386_s1 = inlined_call_operand.vmem [shape: f32[128,32], index: 1, kind: input, shape index: {}]   ;;  %s387_s2 = inlined_call_operand.vmem [shape: f32[1,32], index: 2, kind: input, shape index: {}]   ;;  %s388_s3 = inlined_call_operand.vmem [shape: f32[16,32], index: 3, kind: input, shape index: {}]   ;;  %s389_s4 = inlined_call_operand.hbm [shape: f32[16,32], index: 4, kind: output, shape index: {}]  }
   0x1   :  { %v29_v0 = vld [vmem:[%s386_s1] sm:$0xff]  ;;  %v30_v1 = vld [vmem:[%s386_s1 + $0x8] sm:$0xff]  ;;  %v31_v2 = vld [vmem:[%s386_s1 + $0x10] sm:$0xff]  ;;  %24 = vst.msk [vmem:[#allocation2 + $0x8] sm:$0xff] %vm22_vm0, %v275_v5 }
   0x2   :  { %v215_v3 = vpack.c.bf16 %v30_v1, %v29_v0  ;;  %v32_v4 = vld [vmem:[%s386_s1 + $0x18] sm:$0xff]  ;;  %23 = vst.msk [vmem:[#allocation2] sm:$0xff] %vm22_vm0, %v275_v5  ;;  %v33_v7 = vld [vmem:[%s386_s1 + $0x20] sm:$0xff]  ;;  %v34_v8 = vld [vmem:[%s386_s1 + $0x28] sm:$0xff] }
   0x3   :  { %v219_v6 = vpack.c.bf16 %v32_v4, %v31_v2  ;;  %v223_v9 = vpack.c.bf16 %v34_v8, %v33_v7  ;;  %v27_v10 = vld [vmem:[%s385_s0] sm:$0xff]  ;;  %v35_v11 = vld [vmem:[%s386_s1 + $0x30] sm:$0xff]  ;;  %v36_v12 = vld [vmem:[%s386_s1 + $0x38] sm:$0xff] }
   0x4   :  { %216 = vmatprep.subr.bf16.mxu0 %v215_v3  ;;  %212 = vmatprep.mubr.f32.mxu0 %v27_v10 }
   0x5   :  { %218 = vmatpush3.bf16.msra.mxu0 %v215_v3 }
   0x6   :  { %220 = vmatprep.subr.bf16.mxu0 %v219_v6 }
   0x7   :  { %9 = vsyncpa [#allocation4], 0  ;;  %v227_v13 = vpack.c.bf16 %v36_v12, %v35_v11  ;;  %v37_v14 = vld [vmem:[%s386_s1 + $0x40] sm:$0xff]  ;;  %v38_v15 = vld [vmem:[%s386_s1 + $0x48] sm:$0xff] }
   0x8   :  { %v231_v16 = vpack.c.bf16 %v38_v15, %v37_v14  ;;  %v39_v17 = vld [vmem:[%s386_s1 + $0x50] sm:$0xff]  ;;  %v40_v18 = vld [vmem:[%s386_s1 + $0x58] sm:$0xff]  ;;  %v41_v20 = vld [vmem:[%s386_s1 + $0x60] sm:$0xff] }
   0x9   :  { %222 = vmatpush3.bf16.msra.mxu0 %v219_v6  ;;  %v235_v19 = vpack.c.bf16 %v40_v18, %v39_v17  ;;  %v42_v21 = vld [vmem:[%s386_s1 + $0x68] sm:$0xff]  ;;  %v43_v23 = vld [vmem:[%s386_s1 + $0x70] sm:$0xff]  ;;  %v44_v24 = vld [vmem:[%s386_s1 + $0x78] sm:$0xff] }
   0xa   :  { %224 = vmatprep.subr.bf16.mxu0 %v223_v9  ;;  %v239_v22 = vpack.c.bf16 %v42_v21, %v41_v20  ;;  %v243_v25 = vpack.c.bf16 %v44_v24, %v43_v23  ;;  %v28_v26 = vld [vmem:[%s385_s0 + $0x8] sm:$0xff]  ;;  %v25_v28 = vld [vmem:[#allocation2] sm:$0xff]  ;;  %s276_s0 = smov [#allocation3]  }
   0xb   :  { %v26_v27 = vld [vmem:[#allocation2 + $0x8] sm:$0xff]  ;;  %v161_v33 = vld [vmem:[%s387_s2] ss:$0 sm:$0xff]  ;;  %s150_s28 = sshll.u32 %s276_s0, 4  ;;  %s151_s28 = int_to_ptr.vmem [resolvable:$true] %s150_s28 }
   0xc   :  { %v140_v35 = vld [vmem:[%s388_s3 + $0x8] sm:$0xff]  ;;  %v139_v38 = vld [vmem:[%s388_s3] sm:$0xff]  ;;  %s251_s2 = scalar_lea.vmem %s151_s28, 256  ;;  %p256_p1 = scmp.lt.s32.totalorder %s151_s28, %s151_s28 }
   0xd   :  { %226 = vmatpush3.bf16.msra.mxu0 %v223_v9  ;;  %p252_p0 = scmp.ne.s32.totalorder %s151_s28, %s251_s2  ;;  %p257_p2 = scmp.lt.s32.totalorder %s251_s2, %s251_s2 }
   0xe   :  { %228 = vmatprep.subr.bf16.mxu0 %v227_v13 }
   0xf   :  { %p258_p3 = por %p257_p2, %p256_p1 }
  0x11   :  { %230 = vmatpush3.bf16.msra.mxu0 %v227_v13  ;;  %p259_p4 = pnand %p258_p3, %p252_p0 }
  0x12   :  { %232 = vmatprep.subr.bf16.mxu0 %v231_v16 }
  0x15   :  { %234 = vmatpush3.bf16.msra.mxu0 %v231_v16 }
  0x16   :  { %236 = vmatprep.subr.bf16.mxu0 %v235_v19 }
  0x19   :  { %238 = vmatpush3.bf16.msra.mxu0 %v235_v19 }
  0x1a   :  { %240 = vmatprep.subr.bf16.mxu0 %v239_v22 }
  0x1d   :  { %242 = vmatpush3.bf16.msra.mxu0 %v239_v22 }
  0x1e   :  { %244 = vmatprep.subr.bf16.mxu0 %v243_v25 }
  0x21   :  { %246 = vmatpush3.bf16.msra.mxu0 %v243_v25 }
  0x24   :  { %213 = vmatmul.mubr.f32.vlgmr.msra.gmra.mrb[0].mxu0 %v28_v26 }
  0xf7   :  { %v214_v29 = vpop.f32.mrb[0].mxu0 }
  0xf8   :  { %v121_v30 = vadd.f32 %v214_v29, %v26_v27  ;;  %v111_v31 = vpop.f32.mrb[1].mxu0 }
  0xf9   :  { %v120_v32 = vadd.f32 %v111_v31, %v25_v28 }
  0xfa   :  { %124 = vst.msk [vmem:[#allocation2 + $0x8] sm:$0xff] %vm22_vm0, %v121_v30 }
  0xfb   :  { %123 = vst.msk [vmem:[#allocation2] sm:$0xff] %vm22_vm0, %v120_v32 }
 0x101   :  { %v129_v34 = vld [vmem:[#allocation2 + $0x8] sm:$0xff] }
 0x102   :  { %v128_v36 = vld [vmem:[#allocation2] sm:$0xff]  ;;  %v138_v37 = vadd.f32 %v161_v33, %v129_v34 }
 0x103   :  { %v137_v39 = vadd.f32 %v161_v33, %v128_v36 }
 0x104   :  { %v142_v40 = vadd.f32 %v140_v35, %v138_v37 }
 0x105   :  { %v141_v41 = vadd.f32 %v139_v38, %v137_v39 }
 0x106   :  { %144 = vst.msk [vmem:[#allocation3 + $0x8] sm:$0xff] %vm22_vm0, %v142_v40 }
 0x107   :  { %143 = vst.msk [vmem:[#allocation3] sm:$0xff] %vm22_vm0, %v141_v41 }
 0x108   :  { %262 = shalt.err (!%p259_p4)
}
 0x109   :  { %s263_s7 = scalar_lea.hbm %s389_s4, 256 }
 0x10a   :  { %p264_p5 = scmp.ne.s32.totalorder %s389_s4, %s263_s7  ;;  %p267_p6 = scmp.lt.u32.totalorder %s263_s7, %s389_s4 }
 0x10c   :  { %p269_p7 = pnand %p267_p6, %p264_p5 }
 0x10e   :  { %272 = shalt.err (!%p269_p7)
}
 0x10f   :  { %s277_s11 = smov 128   ;;  %s278_s12 = smov 8  }
 0x110   :  { %156 = dma.vmem_to_hbm [thread:$0]  %s151_s28, 256, %s389_s4, [#allocation4], %s277_s11, %s277_s11, %s278_s12  }
 0x111   :  { %273 = dma.done.wait [#allocation4], 256  }
 0x112   :  { %274 = vsyncadd [#allocation4], 4294967040 }
 0x113   :  { %160 = vsyncpa [#allocation4], 1 }

</bundles_post_ra>
